<compile_context>
chip_gen: v5e
topology: v5e:2x2
jax: 0.10.0
libtpu: 0.0.40
codegen_flags: <defaults>
</compile_context>

<pallas_src>
import functools

import jax
import jax.numpy as jnp
from jax.experimental import pallas as pl
from jax.experimental.pallas import tpu as pltpu


# ---------------------------------------------------------------------------
# helpers
# ---------------------------------------------------------------------------
def _round_up(x, m):
    return ((x + m - 1) // m) * m


def _pick_tile(dim, max_tile, step):
    """Largest multiple of `step` that divides `dim` and is <= max_tile."""
    t = min(dim, max_tile)
    t -= t % step
    while t >= step:
        if dim % t == 0:
            return t
        t -= step
    return dim


def _time_chunk(T):
    for c in (16, 8, 4, 2, 1):
        if T % c == 0:
            return c
    return 1


# ---------------------------------------------------------------------------
# (1)+(3): generic tiled GEMM with bias:  out = A @ B + bias
# ---------------------------------------------------------------------------
def _matmul_bias_kernel(a_ref, b_ref, bias_ref, o_ref, acc_ref):
    @pl.when(pl.program_id(2) == 0)
    def _():
        acc_ref[...] = jnp.zeros_like(acc_ref)

    acc_ref[...] += jnp.dot(a_ref[...], b_ref[...],
                            preferred_element_type=jnp.float32)

    @pl.when(pl.program_id(2) == pl.num_programs(2) - 1)
    def _():
        o_ref[...] = (acc_ref[...] + bias_ref[...]).astype(o_ref.dtype)


def _matmul_bias(a, b, bias):
    """a: [M, K], b: [K, N], bias: [1, N] (f32). Returns f32 [M, N]."""
    M, K = a.shape
    _, N = b.shape
    tm = _pick_tile(M, 256, 8)
    tk = _pick_tile(K, 512, 128)
    tn = _pick_tile(N, 512, 128)
    grid = (M // tm, N // tn, K // tk)
    return pl.pallas_call(
        _matmul_bias_kernel,
        out_shape=jax.ShapeDtypeStruct((M, N), jnp.float32),
        grid_spec=pltpu.PrefetchScalarGridSpec(
            num_scalar_prefetch=0,
            grid=grid,
            in_specs=[
                pl.BlockSpec((tm, tk), lambda i, j, k: (i, k)),
                pl.BlockSpec((tk, tn), lambda i, j, k: (k, j)),
                pl.BlockSpec((1, tn), lambda i, j, k: (0, j)),
            ],
            out_specs=pl.BlockSpec((tm, tn), lambda i, j, k: (i, j)),
            scratch_shapes=[pltpu.VMEM((tm, tn), jnp.float32)],
        ),
        compiler_params=pltpu.CompilerParams(
            dimension_semantics=("parallel", "parallel", "arbitrary")),
    )(a, b, bias)


# ---------------------------------------------------------------------------
# (2): LSTM recurrence.  gates_x already contains x@W_ih + b.
# ---------------------------------------------------------------------------
def _lstm_kernel(gx_ref, whh_ref, h0_ref, c0_ref,
                 hseq_ref, hout_ref, cout_ref,
                 h_sc, c_sc, *, hidden_size, chunk, mxu_dtype):
    t_blk = pl.program_id(1)
    H = hidden_size

    # (Re-)initialize recurrent state at the start of each batch block.
    @pl.when(t_blk == 0)
    def _():
        h_sc[...] = h0_ref[...]
        c_sc[...] = c0_ref[...]

    w = whh_ref[...]  # [Hp, 4*Hp], hoisted out of the time loop

    def step(i, carry):
        h_prev, c_prev = carry
        gates = gx_ref[i] + jnp.dot(h_prev.astype(mxu_dtype), w,
                                    preferred_element_type=jnp.float32)
        # PyTorch gate order i, f, g, o; H is a multiple of 128 so these
        # slices are lane-tile aligned (no copies).
        i_g = jax.nn.sigmoid(gates[:, 0 * H:1 * H])
        f_g = jax.nn.sigmoid(gates[:, 1 * H:2 * H])
        g_g = jnp.tanh(gates[:, 2 * H:3 * H])
        o_g = jax.nn.sigmoid(gates[:, 3 * H:4 * H])
        c_new = f_g * c_prev + i_g * g_g
        h_new = o_g * jnp.tanh(c_new)
        hseq_ref[i] = h_new
        return (h_new, c_new)

    h_fin, c_fin = jax.lax.fori_loop(0, chunk, step,
                                     (h_sc[...], c_sc[...]), unroll=True)
    h_sc[...] = h_fin
    c_sc[...] = c_fin

    # Only write the final state once, on the last time chunk.
    @pl.when(t_blk == pl.num_programs(1) - 1)
    def _():
        hout_ref[...] = h_sc[...]
        cout_ref[...] = c_sc[...]


def _lstm_recurrence(gates_x, w_hh, h0, c0, *, mxu_dtype):
    """gates_x: [T, Bp, 4*Hp] f32, w_hh: [Hp, 4*Hp], h0/c0: [Bp, Hp] f32."""
    T, Bp, G = gates_x.shape
    Hp = G // 4
    chunk = _time_chunk(T)
    nt = T // chunk
    nb = 2 if Bp % 16 == 0 else 1      # parallel batch blocks (v7x megacore)
    BB = Bp // nb

    kernel = functools.partial(_lstm_kernel, hidden_size=Hp, chunk=chunk,
                               mxu_dtype=mxu_dtype)

    return pl.pallas_call(
        kernel,
        out_shape=(
            jax.ShapeDtypeStruct((T, Bp, Hp), jnp.float32),
            jax.ShapeDtypeStruct((Bp, Hp), jnp.float32),
            jax.ShapeDtypeStruct((Bp, Hp), jnp.float32),
        ),
        grid_spec=pltpu.PrefetchScalarGridSpec(
            num_scalar_prefetch=0,
            grid=(nb, nt),
            in_specs=[
                pl.BlockSpec((chunk, BB, G), lambda b, t: (t, b, 0)),
                pl.BlockSpec((Hp, G), lambda b, t: (0, 0)),
                pl.BlockSpec((BB, Hp), lambda b, t: (b, 0)),
                pl.BlockSpec((BB, Hp), lambda b, t: (b, 0)),
            ],
            out_specs=[
                pl.BlockSpec((chunk, BB, Hp), lambda b, t: (t, b, 0)),
                pl.BlockSpec((BB, Hp), lambda b, t: (b, 0)),
                pl.BlockSpec((BB, Hp), lambda b, t: (b, 0)),
            ],
            scratch_shapes=[
                pltpu.VMEM((BB, Hp), jnp.float32),   # h state
                pltpu.VMEM((BB, Hp), jnp.float32),   # c state
            ],
        ),
        compiler_params=pltpu.CompilerParams(
            dimension_semantics=("parallel", "arbitrary")),
    )(gates_x, w_hh, h0, c0)


# ---------------------------------------------------------------------------
# wrapper: full Decoder forward
# ---------------------------------------------------------------------------
def decoder_forward(x_ids, hidden, cell, params, *, mxu_dtype=jnp.bfloat16):
    """x_ids: [B, T] int32, hidden/cell: [1, B, H] f32 (PyTorch convention).
    Returns (output [B, T, V], hidden [1, B, H], cell [1, B, H])."""
    emb_table = params["embedding"]      # [V, E]
    w_ih = params["w_ih"]                # [4H, E]
    w_hh = params["w_hh"]                # [4H, H]
    b_ih, b_hh = params["b_ih"], params["b_hh"]    # [4H]
    w_fc = params["w_fc"]                # [V, H]
    b_fc = params["b_fc"]                # [V]

    B, T = x_ids.shape
    V, E = emb_table.shape
    H = w_hh.shape[1]

    Bp = _round_up(B, 8)
    Ep = _round_up(E, 128)
    Hp = _round_up(H, 128)
    Vp = _round_up(V, 128)
    f32 = jnp.float32

    # -- weight prep: transpose + per-gate padding (so gate slices stay at
    #    k*Hp boundaries); zero padding keeps padded h/c identically zero. --
    w_ih_p = jnp.zeros((Ep, 4, Hp), f32).at[:E, :, :H].set(
        jnp.transpose(w_ih.reshape(4, H, E), (2, 0, 1))).reshape(Ep, 4 * Hp)
    w_hh_p = jnp.zeros((Hp, 4, Hp), f32).at[:H, :, :H].set(
        jnp.transpose(w_hh.reshape(4, H, H), (2, 0, 1))).reshape(Hp, 4 * Hp)
    b_p = jnp.zeros((4, Hp), f32).at[:, :H].set(
        (b_ih + b_hh).reshape(4, H)).reshape(1, 4 * Hp)
    w_fc_p = jnp.zeros((Hp, Vp), f32).at[:H, :V].set(w_fc.T)
    b_fc_p = jnp.zeros((1, Vp), f32).at[0, :V].set(b_fc)

    # -- embedding gather directly in time-major order (no act transpose) --
    ids_p = jnp.zeros((Bp, T), x_ids.dtype).at[:B].set(x_ids)
    emb_p = jnp.zeros((V, Ep), f32).at[:, :E].set(emb_table)
    emb_tm = jnp.take(emb_p, ids_p.T, axis=0)                 # [T, Bp, Ep]

    # (1) input projection as one big GEMM over all T*Bp rows
    gates_x = _matmul_bias(emb_tm.reshape(T * Bp, Ep).astype(mxu_dtype),
                           w_ih_p.astype(mxu_dtype), b_p)
    gates_x = gates_x.reshape(T, Bp, 4 * Hp)

    # (2) sequential LSTM recurrence (only h @ W_hh per step)
    h0 = jnp.zeros((Bp, Hp), f32).at[:B, :H].set(hidden[0])
    c0 = jnp.zeros((Bp, Hp), f32).at[:B, :H].set(cell[0])
    h_seq, h_fin, c_fin = _lstm_recurrence(
        gates_x, w_hh_p.astype(mxu_dtype), h0, c0, mxu_dtype=mxu_dtype)

    # (3) fc projection as one big GEMM over all Bp*T hidden states
    h_bt = jnp.transpose(h_seq, (1, 0, 2)).reshape(Bp * T, Hp)
    logits = _matmul_bias(h_bt.astype(mxu_dtype),
                          w_fc_p.astype(mxu_dtype), b_fc_p)
    logits = logits.reshape(Bp, T, Vp)[:B, :, :V]             # batch_first

    return logits, h_fin[:B, :H][None], c_fin[:B, :H][None]


# ---------------------------------------------------------------------------
# params (PyTorch nn.LSTM / nn.Linear conventions) and pure-JAX reference
# ---------------------------------------------------------------------------
def init_params(key, vocab_size, embed_size, hidden_size):
    ks = jax.random.split(key, 7)
    s = 0.1
    return {
        "embedding": s * jax.random.normal(ks[0], (vocab_size, embed_size), jnp.float32),
        "w_ih": s * jax.random.normal(ks[1], (4 * hidden_size, embed_size), jnp.float32),
        "w_hh": s * jax.random.normal(ks[2], (4 * hidden_size, hidden_size), jnp.float32),
        "b_ih": s * jax.random.normal(ks[3], (4 * hidden_size,), jnp.float32),
        "b_hh": s * jax.random.normal(ks[4], (4 * hidden_size,), jnp.float32),
        "w_fc": s * jax.random.normal(ks[5], (vocab_size, hidden_size), jnp.float32),
        "b_fc": s * jax.random.normal(ks[6], (vocab_size,), jnp.float32),
    }


def _reference_forward(x_ids, hidden, cell, params):
    """Pure-JAX f32 reference (HIGHEST precision matmuls)."""
    H = params["w_hh"].shape[1]
    hp = jax.lax.Precision.HIGHEST
    emb = jnp.take(params["embedding"], x_ids, axis=0)         # [B, T, E]
    h, c = hidden[0], cell[0]
    w_ih_t, w_hh_t = params["w_ih"].T, params["w_hh"].T
    b = params["b_ih"] + params["b_hh"]
    outs = []
    for t in range(x_ids.shape[1]):
        gates = (jnp.dot(emb[:, t], w_ih_t, precision=hp)
                 + jnp.dot(h, w_hh_t, precision=hp) + b)
        i = jax.nn.sigmoid(gates[:, 0 * H:1 * H])
        f = jax.nn.sigmoid(gates[:, 1 * H:2 * H])
        g = jnp.tanh(gates[:, 2 * H:3 * H])
        o = jax.nn.sigmoid(gates[:, 3 * H:4 * H])
        c = f * c + i * g
        h = o * jnp.tanh(c)
        outs.append(jnp.dot(h, params["w_fc"].T, precision=hp) + params["b_fc"])
    return jnp.stack(outs, axis=1), h[None], c[None]


if __name__ == "__main__":
    vocab_size, embed_size, hidden_size = 64, 32, 32
    B, T = 2, 8

    key = jax.random.PRNGKey(0)
    k_ids, k_h, k_c, k_params = jax.random.split(key, 4)

    x_ids = jax.random.randint(k_ids, (B, T), 0, vocab_size, dtype=jnp.int32)
    hidden = 0.1 * jax.random.normal(k_h, (1, B, hidden_size), jnp.float32)
    cell = 0.1 * jax.random.normal(k_c, (1, B, hidden_size), jnp.float32)
    params = init_params(k_params, vocab_size, embed_size, hidden_size)

    fwd_bf16 = jax.jit(functools.partial(decoder_forward, mxu_dtype=jnp.bfloat16))
    fwd_f32 = jax.jit(functools.partial(decoder_forward, mxu_dtype=jnp.float32))

    out, h_out, c_out = fwd_bf16(x_ids, hidden, cell, params)
    jax.block_until_ready((out, h_out, c_out))
    out32, h32, c32 = fwd_f32(x_ids, hidden, cell, params)
    jax.block_until_ready((out32, h32, c32))

    ref_out, ref_h, ref_c = _reference_forward(x_ids, hidden, cell, params)

    assert out.shape == (B, T, vocab_size)
    assert h_out.shape == (1, B, hidden_size)
    assert c_out.shape == (1, B, hidden_size)

    # f32 MXU path: tight check against f32 reference.
    assert jnp.allclose(out32, ref_out, atol=5e-3), float(jnp.abs(out32 - ref_out).max())
    assert jnp.allclose(h32, ref_h, atol=5e-3)
    assert jnp.allclose(c32, ref_c, atol=5e-3)

    # bf16 MXU path (performance default): looser tolerance.
    assert jnp.allclose(out, ref_out, atol=5e-2), float(jnp.abs(out - ref_out).max())
    assert jnp.allclose(h_out, ref_h, atol=5e-2)
    assert jnp.allclose(c_out, ref_c, atol=5e-2)

    print("KERNEL_OK")
</pallas_src>

<mosaic_0001>
module attributes {stable_mosaic.version = 11 : i64} {
  func.func @_matmul_bias_kernel(%arg0: i32, %arg1: i32, %arg2: i32, %arg3: memref<64x128xbf16, #tpu.memory_space<vmem>>, %arg4: memref<128x512xbf16, #tpu.memory_space<vmem>>, %arg5: memref<1x512xf32, #tpu.memory_space<vmem>>, %arg6: memref<64x512xf32, #tpu.memory_space<vmem>>, %arg7: memref<64x512xf32, #tpu.memory_space<vmem>>) attributes {dimension_semantics = [#tpu.dimension_semantics<parallel>, #tpu.dimension_semantics<parallel>, #tpu.dimension_semantics<arbitrary>], iteration_bounds = array<i64: 1, 1, 1>, scalar_prefetch = 0 : i64, scratch_operands = 1 : i64, tpu.core_type = #tpu.core_type<tc>, window_params = [{transform_indices = @transform_0, window_bounds = array<i64: 64, 128>}, {transform_indices = @transform_1, window_bounds = array<i64: 128, 512>}, {transform_indices = @transform_2, window_bounds = array<i64: 1, 512>}, {transform_indices = @transform_3, window_bounds = array<i64: 64, 512>}]} {
    %c0_i32 = arith.constant 0 : i32
    %0 = arith.cmpi eq, %arg2, %c0_i32 : i32
    %1 = arith.extui %0 : i1 to i32
    %c0_i32_0 = arith.constant 0 : i32
    %2 = arith.cmpi ne, %1, %c0_i32_0 : i32
    scf.if %2 {
      %cst_10 = arith.constant 0.000000e+00 : f32
      %12 = vector.broadcast %cst_10 : f32 to vector<64x512xf32>
      %c0_11 = arith.constant 0 : index
      %c0_12 = arith.constant 0 : index
      %13 = vector.load %arg7[%c0_11, %c0_12] : memref<64x512xf32, #tpu.memory_space<vmem>>, vector<64x512xf32>
      tpu.vector_store %arg7[%c0_11, %c0_12], %12 {strides = array<i32>} : memref<64x512xf32, #tpu.memory_space<vmem>>, vector<64x512xf32>,
    } else {
    }
    %c0 = arith.constant 0 : index
    %c0_1 = arith.constant 0 : index
    %3 = vector.load %arg7[%c0, %c0_1] : memref<64x512xf32, #tpu.memory_space<vmem>>, vector<64x512xf32>
    %c0_2 = arith.constant 0 : index
    %c0_3 = arith.constant 0 : index
    %4 = vector.load %arg3[%c0_2, %c0_3] : memref<64x128xbf16, #tpu.memory_space<vmem>>, vector<64x128xbf16>
    %c0_4 = arith.constant 0 : index
    %c0_5 = arith.constant 0 : index
    %5 = vector.load %arg4[%c0_4, %c0_5] : memref<128x512xbf16, #tpu.memory_space<vmem>>, vector<128x512xbf16>
    %cst = arith.constant dense<0.000000e+00> : vector<64x512xf32>
    %6 = tpu.matmul %4, %5, %cst {dimension_numbers = #tpu.dot_dimension_numbers<[1], [0], [0], [1], [0, 0, 1, 1], [], []>} : vector<64x128xbf16>, vector<128x512xbf16>, vector<64x512xf32> -> vector<64x512xf32>
    %7 = arith.addf %3, %6 : vector<64x512xf32>
    %c0_6 = arith.constant 0 : index
    %c0_7 = arith.constant 0 : index
    %8 = vector.load %arg7[%c0_6, %c0_7] : memref<64x512xf32, #tpu.memory_space<vmem>>, vector<64x512xf32>
    tpu.vector_store %arg7[%c0_6, %c0_7], %7 {strides = array<i32>} : memref<64x512xf32, #tpu.memory_space<vmem>>, vector<64x512xf32>,
    %c0_i32_8 = arith.constant 0 : i32
    %9 = arith.cmpi eq, %arg2, %c0_i32_8 : i32
    %10 = arith.extui %9 : i1 to i32
    %c0_i32_9 = arith.constant 0 : i32
    %11 = arith.cmpi ne, %10, %c0_i32_9 : i32
    scf.if %11 {
      %c0_10 = arith.constant 0 : index
      %c0_11 = arith.constant 0 : index
      %12 = vector.load %arg7[%c0_10, %c0_11] : memref<64x512xf32, #tpu.memory_space<vmem>>, vector<64x512xf32>
      %c0_12 = arith.constant 0 : index
      %c0_13 = arith.constant 0 : index
      %13 = vector.load %arg5[%c0_12, %c0_13] : memref<1x512xf32, #tpu.memory_space<vmem>>, vector<1x512xf32>
      %14 = vector.broadcast %13 : vector<1x512xf32> to vector<64x512xf32>
      %15 = arith.addf %12, %14 : vector<64x512xf32>
      %c0_14 = arith.constant 0 : index
      %c0_15 = arith.constant 0 : index
      %16 = vector.load %arg6[%c0_14, %c0_15] : memref<64x512xf32, #tpu.memory_space<vmem>>, vector<64x512xf32>
      tpu.vector_store %arg6[%c0_14, %c0_15], %15 {strides = array<i32>} : memref<64x512xf32, #tpu.memory_space<vmem>>, vector<64x512xf32>,
    } else {
    }
    return
  }
  func.func @transform_0(%arg0: i32, %arg1: i32, %arg2: i32) -> (i32, i32) {
    %c0_i32 = arith.constant 0 : i32
    return %arg0, %arg2 : i32, i32
  }
  func.func @transform_1(%arg0: i32, %arg1: i32, %arg2: i32) -> (i32, i32) {
    %c0_i32 = arith.constant 0 : i32
    return %arg2, %arg1 : i32, i32
  }
  func.func @transform_2(%arg0: i32, %arg1: i32, %arg2: i32) -> (i32, i32) {
    %c0_i32 = arith.constant 0 : i32
    %c0_i32_0 = arith.constant 0 : i32
    return %c0_i32, %arg1 : i32, i32
  }
  func.func @transform_3(%arg0: i32, %arg1: i32, %arg2: i32) -> (i32, i32) {
    %c0_i32 = arith.constant 0 : i32
    return %arg0, %arg1 : i32, i32
  }
}

module attributes {stable_mosaic.version = 11 : i64} {
  func.func @_lstm_kernel(%arg0: i32, %arg1: i32, %arg2: memref<8x8x512xf32, #tpu.memory_space<vmem>>, %arg3: memref<128x512xbf16, #tpu.memory_space<vmem>>, %arg4: memref<8x128xf32, #tpu.memory_space<vmem>>, %arg5: memref<8x128xf32, #tpu.memory_space<vmem>>, %arg6: memref<8x8x128xf32, #tpu.memory_space<vmem>>, %arg7: memref<8x128xf32, #tpu.memory_space<vmem>>, %arg8: memref<8x128xf32, #tpu.memory_space<vmem>>, %arg9: memref<8x128xf32, #tpu.memory_space<vmem>>, %arg10: memref<8x128xf32, #tpu.memory_space<vmem>>) attributes {dimension_semantics = [#tpu.dimension_semantics<parallel>, #tpu.dimension_semantics<arbitrary>], iteration_bounds = array<i64: 1, 1>, scalar_prefetch = 0 : i64, scratch_operands = 2 : i64, tpu.core_type = #tpu.core_type<tc>, window_params = [{transform_indices = @transform_0, window_bounds = array<i64: 8, 8, 512>}, {pipeline_mode = #tpu.pipeline_mode<synchronous>, transform_indices = @transform_1, window_bounds = array<i64: 128, 512>}, {transform_indices = @transform_2, window_bounds = array<i64: 8, 128>}, {transform_indices = @transform_3, window_bounds = array<i64: 8, 128>}, {transform_indices = @transform_4, window_bounds = array<i64: 8, 8, 128>}, {transform_indices = @transform_5, window_bounds = array<i64: 8, 128>}, {transform_indices = @transform_6, window_bounds = array<i64: 8, 128>}]} {
    %c0_i32 = arith.constant 0 : i32
    %0 = arith.cmpi eq, %arg1, %c0_i32 : i32
    %1 = arith.extui %0 : i1 to i32
    %c0_i32_0 = arith.constant 0 : i32
    %2 = arith.cmpi ne, %1, %c0_i32_0 : i32
    scf.if %2 {
      %c0_76 = arith.constant 0 : index
      %c0_77 = arith.constant 0 : index
      %291 = vector.load %arg4[%c0_76, %c0_77] : memref<8x128xf32, #tpu.memory_space<vmem>>, vector<8x128xf32>
      %c0_78 = arith.constant 0 : index
      %c0_79 = arith.constant 0 : index
      %292 = vector.load %arg9[%c0_78, %c0_79] : memref<8x128xf32, #tpu.memory_space<vmem>>, vector<8x128xf32>
      tpu.vector_store %arg9[%c0_78, %c0_79], %291 {strides = array<i32>} : memref<8x128xf32, #tpu.memory_space<vmem>>, vector<8x128xf32>,
      %c0_80 = arith.constant 0 : index
      %c0_81 = arith.constant 0 : index
      %293 = vector.load %arg5[%c0_80, %c0_81] : memref<8x128xf32, #tpu.memory_space<vmem>>, vector<8x128xf32>
      %c0_82 = arith.constant 0 : index
      %c0_83 = arith.constant 0 : index
      %294 = vector.load %arg10[%c0_82, %c0_83] : memref<8x128xf32, #tpu.memory_space<vmem>>, vector<8x128xf32>
      tpu.vector_store %arg10[%c0_82, %c0_83], %293 {strides = array<i32>} : memref<8x128xf32, #tpu.memory_space<vmem>>, vector<8x128xf32>,
    } else {
    }
    %c0 = arith.constant 0 : index
    %c0_1 = arith.constant 0 : index
    %3 = vector.load %arg3[%c0, %c0_1] : memref<128x512xbf16, #tpu.memory_space<vmem>>, vector<128x512xbf16>
    %c0_2 = arith.constant 0 : index
    %c0_3 = arith.constant 0 : index
    %4 = vector.load %arg9[%c0_2, %c0_3] : memref<8x128xf32, #tpu.memory_space<vmem>>, vector<8x128xf32>
    %c0_4 = arith.constant 0 : index
    %c0_5 = arith.constant 0 : index
    %5 = vector.load %arg10[%c0_4, %c0_5] : memref<8x128xf32, #tpu.memory_space<vmem>>, vector<8x128xf32>
    %c0_i32_6 = arith.constant 0 : i32
    %6 = arith.index_cast %c0_i32_6 : i32 to index
    %c0_7 = arith.constant 0 : index
    %c0_8 = arith.constant 0 : index
    %7 = vector.load %arg2[%6, %c0_7, %c0_8] : memref<8x8x512xf32, #tpu.memory_space<vmem>>, vector<1x8x512xf32>
    %8 = vector.shape_cast %7 : vector<1x8x512xf32> to vector<8x512xf32>
    %9 = arith.truncf %4 : vector<8x128xf32> to vector<8x128xbf16>
    %cst = arith.constant dense<0.000000e+00> : vector<8x512xf32>
    %10 = tpu.matmul %9, %3, %cst {dimension_numbers = #tpu.dot_dimension_numbers<[1], [0], [0], [1], [0, 0, 1, 1], [], []>} : vector<8x128xbf16>, vector<128x512xbf16>, vector<8x512xf32> -> vector<8x512xf32>
    %11 = arith.addf %8, %10 : vector<8x512xf32>
    %12 = vector.extract_strided_slice %11 {offsets = [0, 0], sizes = [8, 128], strides = [1, 1]} : vector<8x512xf32> to vector<8x128xf32>
    %13 = arith.negf %12 : vector<8x128xf32>
    %14 = math.exp %13 : vector<8x128xf32>
    %cst_9 = arith.constant 1.000000e+00 : f32
    %15 = vector.broadcast %cst_9 : f32 to vector<8x128xf32>
    %16 = arith.addf %15, %14 : vector<8x128xf32>
    %17 = arith.divf %15, %16 : vector<8x128xf32>
    %18 = vector.extract_strided_slice %11 {offsets = [0, 128], sizes = [8, 128], strides = [1, 1]} : vector<8x512xf32> to vector<8x128xf32>
    %19 = arith.negf %18 : vector<8x128xf32>
    %20 = math.exp %19 : vector<8x128xf32>
    %cst_10 = arith.constant 1.000000e+00 : f32
    %21 = vector.broadcast %cst_10 : f32 to vector<8x128xf32>
    %22 = arith.addf %21, %20 : vector<8x128xf32>
    %23 = arith.divf %21, %22 : vector<8x128xf32>
    %24 = vector.extract_strided_slice %11 {offsets = [0, 256], sizes = [8, 128], strides = [1, 1]} : vector<8x512xf32> to vector<8x128xf32>
    %25 = math.tanh %24 : vector<8x128xf32>
    %26 = vector.extract_strided_slice %11 {offsets = [0, 384], sizes = [8, 128], strides = [1, 1]} : vector<8x512xf32> to vector<8x128xf32>
    %27 = arith.negf %26 : vector<8x128xf32>
    %28 = math.exp %27 : vector<8x128xf32>
    %cst_11 = arith.constant 1.000000e+00 : f32
    %29 = vector.broadcast %cst_11 : f32 to vector<8x128xf32>
    %30 = arith.addf %29, %28 : vector<8x128xf32>
    %31 = arith.divf %29, %30 : vector<8x128xf32>
    %32 = arith.mulf %23, %5 : vector<8x128xf32>
    %33 = arith.mulf %17, %25 : vector<8x128xf32>
    %34 = arith.addf %32, %33 : vector<8x128xf32>
    %35 = math.tanh %34 : vector<8x128xf32>
    %36 = arith.mulf %31, %35 : vector<8x128xf32>
    %37 = arith.index_cast %c0_i32_6 : i32 to index
    %c0_12 = arith.constant 0 : index
    %c0_13 = arith.constant 0 : index
    %38 = vector.load %arg6[%37, %c0_12, %c0_13] : memref<8x8x128xf32, #tpu.memory_space<vmem>>, vector<1x8x128xf32>
    %39 = vector.shape_cast %38 : vector<1x8x128xf32> to vector<8x128xf32>
    %40 = vector.shape_cast %36 : vector<8x128xf32> to vector<1x8x128xf32>
    tpu.vector_store %arg6[%37, %c0_12, %c0_13], %40 {strides = array<i32>} : memref<8x8x128xf32, #tpu.memory_space<vmem>>, vector<1x8x128xf32>,
    %c1_i32 = arith.constant 1 : i32
    %41 = arith.index_cast %c1_i32 : i32 to index
    %c0_14 = arith.constant 0 : index
    %c0_15 = arith.constant 0 : index
    %42 = vector.load %arg2[%41, %c0_14, %c0_15] : memref<8x8x512xf32, #tpu.memory_space<vmem>>, vector<1x8x512xf32>
    %43 = vector.shape_cast %42 : vector<1x8x512xf32> to vector<8x512xf32>
    %44 = arith.truncf %36 : vector<8x128xf32> to vector<8x128xbf16>
    %cst_16 = arith.constant dense<0.000000e+00> : vector<8x512xf32>
    %45 = tpu.matmul %44, %3, %cst_16 {dimension_numbers = #tpu.dot_dimension_numbers<[1], [0], [0], [1], [0, 0, 1, 1], [], []>} : vector<8x128xbf16>, vector<128x512xbf16>, vector<8x512xf32> -> vector<8x512xf32>
    %46 = arith.addf %43, %45 : vector<8x512xf32>
    %47 = vector.extract_strided_slice %46 {offsets = [0, 0], sizes = [8, 128], strides = [1, 1]} : vector<8x512xf32> to vector<8x128xf32>
    %48 = arith.negf %47 : vector<8x128xf32>
    %49 = math.exp %48 : vector<8x128xf32>
    %cst_17 = arith.constant 1.000000e+00 : f32
    %50 = vector.broadcast %cst_17 : f32 to vector<8x128xf32>
    %51 = arith.addf %50, %49 : vector<8x128xf32>
    %52 = arith.divf %50, %51 : vector<8x128xf32>
    %53 = vector.extract_strided_slice %46 {offsets = [0, 128], sizes = [8, 128], strides = [1, 1]} : vector<8x512xf32> to vector<8x128xf32>
    %54 = arith.negf %53 : vector<8x128xf32>
    %55 = math.exp %54 : vector<8x128xf32>
    %cst_18 = arith.constant 1.000000e+00 : f32
    %56 = vector.broadcast %cst_18 : f32 to vector<8x128xf32>
    %57 = arith.addf %56, %55 : vector<8x128xf32>
    %58 = arith.divf %56, %57 : vector<8x128xf32>
    %59 = vector.extract_strided_slice %46 {offsets = [0, 256], sizes = [8, 128], strides = [1, 1]} : vector<8x512xf32> to vector<8x128xf32>
    %60 = math.tanh %59 : vector<8x128xf32>
    %61 = vector.extract_strided_slice %46 {offsets = [0, 384], sizes = [8, 128], strides = [1, 1]} : vector<8x512xf32> to vector<8x128xf32>
    %62 = arith.negf %61 : vector<8x128xf32>
    %63 = math.exp %62 : vector<8x128xf32>
    %cst_19 = arith.constant 1.000000e+00 : f32
    %64 = vector.broadcast %cst_19 : f32 to vector<8x128xf32>
    %65 = arith.addf %64, %63 : vector<8x128xf32>
    %66 = arith.divf %64, %65 : vector<8x128xf32>
    %67 = arith.mulf %58, %34 : vector<8x128xf32>
    %68 = arith.mulf %52, %60 : vector<8x128xf32>
    %69 = arith.addf %67, %68 : vector<8x128xf32>
    %70 = math.tanh %69 : vector<8x128xf32>
    %71 = arith.mulf %66, %70 : vector<8x128xf32>
    %72 = arith.index_cast %c1_i32 : i32 to index
    %c0_20 = arith.constant 0 : index
    %c0_21 = arith.constant 0 : index
    %73 = vector.load %arg6[%72, %c0_20, %c0_21] : memref<8x8x128xf32, #tpu.memory_space<vmem>>, vector<1x8x128xf32>
    %74 = vector.shape_cast %73 : vector<1x8x128xf32> to vector<8x128xf32>
    %75 = vector.shape_cast %71 : vector<8x128xf32> to vector<1x8x128xf32>
    tpu.vector_store %arg6[%72, %c0_20, %c0_21], %75 {strides = array<i32>} : memref<8x8x128xf32, #tpu.memory_space<vmem>>, vector<1x8x128xf32>,
    %c2_i32 = arith.constant 2 : i32
    %76 = arith.index_cast %c2_i32 : i32 to index
    %c0_22 = arith.constant 0 : index
    %c0_23 = arith.constant 0 : index
    %77 = vector.load %arg2[%76, %c0_22, %c0_23] : memref<8x8x512xf32, #tpu.memory_space<vmem>>, vector<1x8x512xf32>
    %78 = vector.shape_cast %77 : vector<1x8x512xf32> to vector<8x512xf32>
    %79 = arith.truncf %71 : vector<8x128xf32> to vector<8x128xbf16>
    %cst_24 = arith.constant dense<0.000000e+00> : vector<8x512xf32>
    %80 = tpu.matmul %79, %3, %cst_24 {dimension_numbers = #tpu.dot_dimension_numbers<[1], [0], [0], [1], [0, 0, 1, 1], [], []>} : vector<8x128xbf16>, vector<128x512xbf16>, vector<8x512xf32> -> vector<8x512xf32>
    %81 = arith.addf %78, %80 : vector<8x512xf32>
    %82 = vector.extract_strided_slice %81 {offsets = [0, 0], sizes = [8, 128], strides = [1, 1]} : vector<8x512xf32> to vector<8x128xf32>
    %83 = arith.negf %82 : vector<8x128xf32>
    %84 = math.exp %83 : vector<8x128xf32>
    %cst_25 = arith.constant 1.000000e+00 : f32
    %85 = vector.broadcast %cst_25 : f32 to vector<8x128xf32>
    %86 = arith.addf %85, %84 : vector<8x128xf32>
    %87 = arith.divf %85, %86 : vector<8x128xf32>
    %88 = vector.extract_strided_slice %81 {offsets = [0, 128], sizes = [8, 128], strides = [1, 1]} : vector<8x512xf32> to vector<8x128xf32>
    %89 = arith.negf %88 : vector<8x128xf32>
    %90 = math.exp %89 : vector<8x128xf32>
    %cst_26 = arith.constant 1.000000e+00 : f32
    %91 = vector.broadcast %cst_26 : f32 to vector<8x128xf32>
    %92 = arith.addf %91, %90 : vector<8x128xf32>
    %93 = arith.divf %91, %92 : vector<8x128xf32>
    %94 = vector.extract_strided_slice %81 {offsets = [0, 256], sizes = [8, 128], strides = [1, 1]} : vector<8x512xf32> to vector<8x128xf32>
    %95 = math.tanh %94 : vector<8x128xf32>
    %96 = vector.extract_strided_slice %81 {offsets = [0, 384], sizes = [8, 128], strides = [1, 1]} : vector<8x512xf32> to vector<8x128xf32>
    %97 = arith.negf %96 : vector<8x128xf32>
    %98 = math.exp %97 : vector<8x128xf32>
    %cst_27 = arith.constant 1.000000e+00 : f32
    %99 = vector.broadcast %cst_27 : f32 to vector<8x128xf32>
    %100 = arith.addf %99, %98 : vector<8x128xf32>
    %101 = arith.divf %99, %100 : vector<8x128xf32>
    %102 = arith.mulf %93, %69 : vector<8x128xf32>
    %103 = arith.mulf %87, %95 : vector<8x128xf32>
    %104 = arith.addf %102, %103 : vector<8x128xf32>
    %105 = math.tanh %104 : vector<8x128xf32>
    %106 = arith.mulf %101, %105 : vector<8x128xf32>
    %107 = arith.index_cast %c2_i32 : i32 to index
    %c0_28 = arith.constant 0 : index
    %c0_29 = arith.constant 0 : index
    %108 = vector.load %arg6[%107, %c0_28, %c0_29] : memref<8x8x128xf32, #tpu.memory_space<vmem>>, vector<1x8x128xf32>
    %109 = vector.shape_cast %108 : vector<1x8x128xf32> to vector<8x128xf32>
    %110 = vector.shape_cast %106 : vector<8x128xf32> to vector<1x8x128xf32>
    tpu.vector_store %arg6[%107, %c0_28, %c0_29], %110 {strides = array<i32>} : memref<8x8x128xf32, #tpu.memory_space<vmem>>, vector<1x8x128xf32>,
    %c3_i32 = arith.constant 3 : i32
    %111 = arith.index_cast %c3_i32 : i32 to index
    %c0_30 = arith.constant 0 : index
    %c0_31 = arith.constant 0 : index
    %112 = vector.load %arg2[%111, %c0_30, %c0_31] : memref<8x8x512xf32, #tpu.memory_space<vmem>>, vector<1x8x512xf32>
    %113 = vector.shape_cast %112 : vector<1x8x512xf32> to vector<8x512xf32>
    %114 = arith.truncf %106 : vector<8x128xf32> to vector<8x128xbf16>
    %cst_32 = arith.constant dense<0.000000e+00> : vector<8x512xf32>
    %115 = tpu.matmul %114, %3, %cst_32 {dimension_numbers = #tpu.dot_dimension_numbers<[1], [0], [0], [1], [0, 0, 1, 1], [], []>} : vector<8x128xbf16>, vector<128x512xbf16>, vector<8x512xf32> -> vector<8x512xf32>
    %116 = arith.addf %113, %115 : vector<8x512xf32>
    %117 = vector.extract_strided_slice %116 {offsets = [0, 0], sizes = [8, 128], strides = [1, 1]} : vector<8x512xf32> to vector<8x128xf32>
    %118 = arith.negf %117 : vector<8x128xf32>
    %119 = math.exp %118 : vector<8x128xf32>
    %cst_33 = arith.constant 1.000000e+00 : f32
    %120 = vector.broadcast %cst_33 : f32 to vector<8x128xf32>
    %121 = arith.addf %120, %119 : vector<8x128xf32>
    %122 = arith.divf %120, %121 : vector<8x128xf32>
    %123 = vector.extract_strided_slice %116 {offsets = [0, 128], sizes = [8, 128], strides = [1, 1]} : vector<8x512xf32> to vector<8x128xf32>
    %124 = arith.negf %123 : vector<8x128xf32>
    %125 = math.exp %124 : vector<8x128xf32>
    %cst_34 = arith.constant 1.000000e+00 : f32
    %126 = vector.broadcast %cst_34 : f32 to vector<8x128xf32>
    %127 = arith.addf %126, %125 : vector<8x128xf32>
    %128 = arith.divf %126, %127 : vector<8x128xf32>
    %129 = vector.extract_strided_slice %116 {offsets = [0, 256], sizes = [8, 128], strides = [1, 1]} : vector<8x512xf32> to vector<8x128xf32>
    %130 = math.tanh %129 : vector<8x128xf32>
    %131 = vector.extract_strided_slice %116 {offsets = [0, 384], sizes = [8, 128], strides = [1, 1]} : vector<8x512xf32> to vector<8x128xf32>
    %132 = arith.negf %131 : vector<8x128xf32>
    %133 = math.exp %132 : vector<8x128xf32>
    %cst_35 = arith.constant 1.000000e+00 : f32
    %134 = vector.broadcast %cst_35 : f32 to vector<8x128xf32>
    %135 = arith.addf %134, %133 : vector<8x128xf32>
    %136 = arith.divf %134, %135 : vector<8x128xf32>
    %137 = arith.mulf %128, %104 : vector<8x128xf32>
    %138 = arith.mulf %122, %130 : vector<8x128xf32>
    %139 = arith.addf %137, %138 : vector<8x128xf32>
    %140 = math.tanh %139 : vector<8x128xf32>
    %141 = arith.mulf %136, %140 : vector<8x128xf32>
    %142 = arith.index_cast %c3_i32 : i32 to index
    %c0_36 = arith.constant 0 : index
    %c0_37 = arith.constant 0 : index
    %143 = vector.load %arg6[%142, %c0_36, %c0_37] : memref<8x8x128xf32, #tpu.memory_space<vmem>>, vector<1x8x128xf32>
    %144 = vector.shape_cast %143 : vector<1x8x128xf32> to vector<8x128xf32>
    %145 = vector.shape_cast %141 : vector<8x128xf32> to vector<1x8x128xf32>
    tpu.vector_store %arg6[%142, %c0_36, %c0_37], %145 {strides = array<i32>} : memref<8x8x128xf32, #tpu.memory_space<vmem>>, vector<1x8x128xf32>,
    %c4_i32 = arith.constant 4 : i32
    %146 = arith.index_cast %c4_i32 : i32 to index
    %c0_38 = arith.constant 0 : index
    %c0_39 = arith.constant 0 : index
    %147 = vector.load %arg2[%146, %c0_38, %c0_39] : memref<8x8x512xf32, #tpu.memory_space<vmem>>, vector<1x8x512xf32>
    %148 = vector.shape_cast %147 : vector<1x8x512xf32> to vector<8x512xf32>
    %149 = arith.truncf %141 : vector<8x128xf32> to vector<8x128xbf16>
    %cst_40 = arith.constant dense<0.000000e+00> : vector<8x512xf32>
    %150 = tpu.matmul %149, %3, %cst_40 {dimension_numbers = #tpu.dot_dimension_numbers<[1], [0], [0], [1], [0, 0, 1, 1], [], []>} : vector<8x128xbf16>, vector<128x512xbf16>, vector<8x512xf32> -> vector<8x512xf32>
    %151 = arith.addf %148, %150 : vector<8x512xf32>
    %152 = vector.extract_strided_slice %151 {offsets = [0, 0], sizes = [8, 128], strides = [1, 1]} : vector<8x512xf32> to vector<8x128xf32>
    %153 = arith.negf %152 : vector<8x128xf32>
    %154 = math.exp %153 : vector<8x128xf32>
    %cst_41 = arith.constant 1.000000e+00 : f32
    %155 = vector.broadcast %cst_41 : f32 to vector<8x128xf32>
    %156 = arith.addf %155, %154 : vector<8x128xf32>
    %157 = arith.divf %155, %156 : vector<8x128xf32>
    %158 = vector.extract_strided_slice %151 {offsets = [0, 128], sizes = [8, 128], strides = [1, 1]} : vector<8x512xf32> to vector<8x128xf32>
    %159 = arith.negf %158 : vector<8x128xf32>
    %160 = math.exp %159 : vector<8x128xf32>
    %cst_42 = arith.constant 1.000000e+00 : f32
    %161 = vector.broadcast %cst_42 : f32 to vector<8x128xf32>
    %162 = arith.addf %161, %160 : vector<8x128xf32>
    %163 = arith.divf %161, %162 : vector<8x128xf32>
    %164 = vector.extract_strided_slice %151 {offsets = [0, 256], sizes = [8, 128], strides = [1, 1]} : vector<8x512xf32> to vector<8x128xf32>
    %165 = math.tanh %164 : vector<8x128xf32>
    %166 = vector.extract_strided_slice %151 {offsets = [0, 384], sizes = [8, 128], strides = [1, 1]} : vector<8x512xf32> to vector<8x128xf32>
    %167 = arith.negf %166 : vector<8x128xf32>
    %168 = math.exp %167 : vector<8x128xf32>
    %cst_43 = arith.constant 1.000000e+00 : f32
    %169 = vector.broadcast %cst_43 : f32 to vector<8x128xf32>
    %170 = arith.addf %169, %168 : vector<8x128xf32>
    %171 = arith.divf %169, %170 : vector<8x128xf32>
    %172 = arith.mulf %163, %139 : vector<8x128xf32>
    %173 = arith.mulf %157, %165 : vector<8x128xf32>
    %174 = arith.addf %172, %173 : vector<8x128xf32>
    %175 = math.tanh %174 : vector<8x128xf32>
    %176 = arith.mulf %171, %175 : vector<8x128xf32>
    %177 = arith.index_cast %c4_i32 : i32 to index
    %c0_44 = arith.constant 0 : index
    %c0_45 = arith.constant 0 : index
    %178 = vector.load %arg6[%177, %c0_44, %c0_45] : memref<8x8x128xf32, #tpu.memory_space<vmem>>, vector<1x8x128xf32>
    %179 = vector.shape_cast %178 : vector<1x8x128xf32> to vector<8x128xf32>
    %180 = vector.shape_cast %176 : vector<8x128xf32> to vector<1x8x128xf32>
    tpu.vector_store %arg6[%177, %c0_44, %c0_45], %180 {strides = array<i32>} : memref<8x8x128xf32, #tpu.memory_space<vmem>>, vector<1x8x128xf32>,
    %c5_i32 = arith.constant 5 : i32
    %181 = arith.index_cast %c5_i32 : i32 to index
    %c0_46 = arith.constant 0 : index
    %c0_47 = arith.constant 0 : index
    %182 = vector.load %arg2[%181, %c0_46, %c0_47] : memref<8x8x512xf32, #tpu.memory_space<vmem>>, vector<1x8x512xf32>
    %183 = vector.shape_cast %182 : vector<1x8x512xf32> to vector<8x512xf32>
    %184 = arith.truncf %176 : vector<8x128xf32> to vector<8x128xbf16>
    %cst_48 = arith.constant dense<0.000000e+00> : vector<8x512xf32>
    %185 = tpu.matmul %184, %3, %cst_48 {dimension_numbers = #tpu.dot_dimension_numbers<[1], [0], [0], [1], [0, 0, 1, 1], [], []>} : vector<8x128xbf16>, vector<128x512xbf16>, vector<8x512xf32> -> vector<8x512xf32>
    %186 = arith.addf %183, %185 : vector<8x512xf32>
    %187 = vector.extract_strided_slice %186 {offsets = [0, 0], sizes = [8, 128], strides = [1, 1]} : vector<8x512xf32> to vector<8x128xf32>
    %188 = arith.negf %187 : vector<8x128xf32>
    %189 = math.exp %188 : vector<8x128xf32>
    %cst_49 = arith.constant 1.000000e+00 : f32
    %190 = vector.broadcast %cst_49 : f32 to vector<8x128xf32>
    %191 = arith.addf %190, %189 : vector<8x128xf32>
    %192 = arith.divf %190, %191 : vector<8x128xf32>
    %193 = vector.extract_strided_slice %186 {offsets = [0, 128], sizes = [8, 128], strides = [1, 1]} : vector<8x512xf32> to vector<8x128xf32>
    %194 = arith.negf %193 : vector<8x128xf32>
    %195 = math.exp %194 : vector<8x128xf32>
    %cst_50 = arith.constant 1.000000e+00 : f32
    %196 = vector.broadcast %cst_50 : f32 to vector<8x128xf32>
    %197 = arith.addf %196, %195 : vector<8x128xf32>
    %198 = arith.divf %196, %197 : vector<8x128xf32>
    %199 = vector.extract_strided_slice %186 {offsets = [0, 256], sizes = [8, 128], strides = [1, 1]} : vector<8x512xf32> to vector<8x128xf32>
    %200 = math.tanh %199 : vector<8x128xf32>
    %201 = vector.extract_strided_slice %186 {offsets = [0, 384], sizes = [8, 128], strides = [1, 1]} : vector<8x512xf32> to vector<8x128xf32>
    %202 = arith.negf %201 : vector<8x128xf32>
    %203 = math.exp %202 : vector<8x128xf32>
    %cst_51 = arith.constant 1.000000e+00 : f32
    %204 = vector.broadcast %cst_51 : f32 to vector<8x128xf32>
    %205 = arith.addf %204, %203 : vector<8x128xf32>
    %206 = arith.divf %204, %205 : vector<8x128xf32>
    %207 = arith.mulf %198, %174 : vector<8x128xf32>
    %208 = arith.mulf %192, %200 : vector<8x128xf32>
    %209 = arith.addf %207, %208 : vector<8x128xf32>
    %210 = math.tanh %209 : vector<8x128xf32>
    %211 = arith.mulf %206, %210 : vector<8x128xf32>
    %212 = arith.index_cast %c5_i32 : i32 to index
    %c0_52 = arith.constant 0 : index
    %c0_53 = arith.constant 0 : index
    %213 = vector.load %arg6[%212, %c0_52, %c0_53] : memref<8x8x128xf32, #tpu.memory_space<vmem>>, vector<1x8x128xf32>
    %214 = vector.shape_cast %213 : vector<1x8x128xf32> to vector<8x128xf32>
    %215 = vector.shape_cast %211 : vector<8x128xf32> to vector<1x8x128xf32>
    tpu.vector_store %arg6[%212, %c0_52, %c0_53], %215 {strides = array<i32>} : memref<8x8x128xf32, #tpu.memory_space<vmem>>, vector<1x8x128xf32>,
    %c6_i32 = arith.constant 6 : i32
    %216 = arith.index_cast %c6_i32 : i32 to index
    %c0_54 = arith.constant 0 : index
    %c0_55 = arith.constant 0 : index
    %217 = vector.load %arg2[%216, %c0_54, %c0_55] : memref<8x8x512xf32, #tpu.memory_space<vmem>>, vector<1x8x512xf32>
    %218 = vector.shape_cast %217 : vector<1x8x512xf32> to vector<8x512xf32>
    %219 = arith.truncf %211 : vector<8x128xf32> to vector<8x128xbf16>
    %cst_56 = arith.constant dense<0.000000e+00> : vector<8x512xf32>
    %220 = tpu.matmul %219, %3, %cst_56 {dimension_numbers = #tpu.dot_dimension_numbers<[1], [0], [0], [1], [0, 0, 1, 1], [], []>} : vector<8x128xbf16>, vector<128x512xbf16>, vector<8x512xf32> -> vector<8x512xf32>
    %221 = arith.addf %218, %220 : vector<8x512xf32>
    %222 = vector.extract_strided_slice %221 {offsets = [0, 0], sizes = [8, 128], strides = [1, 1]} : vector<8x512xf32> to vector<8x128xf32>
    %223 = arith.negf %222 : vector<8x128xf32>
    %224 = math.exp %223 : vector<8x128xf32>
    %cst_57 = arith.constant 1.000000e+00 : f32
    %225 = vector.broadcast %cst_57 : f32 to vector<8x128xf32>
    %226 = arith.addf %225, %224 : vector<8x128xf32>
    %227 = arith.divf %225, %226 : vector<8x128xf32>
    %228 = vector.extract_strided_slice %221 {offsets = [0, 128], sizes = [8, 128], strides = [1, 1]} : vector<8x512xf32> to vector<8x128xf32>
    %229 = arith.negf %228 : vector<8x128xf32>
    %230 = math.exp %229 : vector<8x128xf32>
    %cst_58 = arith.constant 1.000000e+00 : f32
    %231 = vector.broadcast %cst_58 : f32 to vector<8x128xf32>
    %232 = arith.addf %231, %230 : vector<8x128xf32>
    %233 = arith.divf %231, %232 : vector<8x128xf32>
    %234 = vector.extract_strided_slice %221 {offsets = [0, 256], sizes = [8, 128], strides = [1, 1]} : vector<8x512xf32> to vector<8x128xf32>
    %235 = math.tanh %234 : vector<8x128xf32>
    %236 = vector.extract_strided_slice %221 {offsets = [0, 384], sizes = [8, 128], strides = [1, 1]} : vector<8x512xf32> to vector<8x128xf32>
    %237 = arith.negf %236 : vector<8x128xf32>
    %238 = math.exp %237 : vector<8x128xf32>
    %cst_59 = arith.constant 1.000000e+00 : f32
    %239 = vector.broadcast %cst_59 : f32 to vector<8x128xf32>
    %240 = arith.addf %239, %238 : vector<8x128xf32>
    %241 = arith.divf %239, %240 : vector<8x128xf32>
    %242 = arith.mulf %233, %209 : vector<8x128xf32>
    %243 = arith.mulf %227, %235 : vector<8x128xf32>
    %244 = arith.addf %242, %243 : vector<8x128xf32>
    %245 = math.tanh %244 : vector<8x128xf32>
    %246 = arith.mulf %241, %245 : vector<8x128xf32>
    %247 = arith.index_cast %c6_i32 : i32 to index
    %c0_60 = arith.constant 0 : index
    %c0_61 = arith.constant 0 : index
    %248 = vector.load %arg6[%247, %c0_60, %c0_61] : memref<8x8x128xf32, #tpu.memory_space<vmem>>, vector<1x8x128xf32>
    %249 = vector.shape_cast %248 : vector<1x8x128xf32> to vector<8x128xf32>
    %250 = vector.shape_cast %246 : vector<8x128xf32> to vector<1x8x128xf32>
    tpu.vector_store %arg6[%247, %c0_60, %c0_61], %250 {strides = array<i32>} : memref<8x8x128xf32, #tpu.memory_space<vmem>>, vector<1x8x128xf32>,
    %c7_i32 = arith.constant 7 : i32
    %251 = arith.index_cast %c7_i32 : i32 to index
    %c0_62 = arith.constant 0 : index
    %c0_63 = arith.constant 0 : index
    %252 = vector.load %arg2[%251, %c0_62, %c0_63] : memref<8x8x512xf32, #tpu.memory_space<vmem>>, vector<1x8x512xf32>
    %253 = vector.shape_cast %252 : vector<1x8x512xf32> to vector<8x512xf32>
    %254 = arith.truncf %246 : vector<8x128xf32> to vector<8x128xbf16>
    %cst_64 = arith.constant dense<0.000000e+00> : vector<8x512xf32>
    %255 = tpu.matmul %254, %3, %cst_64 {dimension_numbers = #tpu.dot_dimension_numbers<[1], [0], [0], [1], [0, 0, 1, 1], [], []>} : vector<8x128xbf16>, vector<128x512xbf16>, vector<8x512xf32> -> vector<8x512xf32>
    %256 = arith.addf %253, %255 : vector<8x512xf32>
    %257 = vector.extract_strided_slice %256 {offsets = [0, 0], sizes = [8, 128], strides = [1, 1]} : vector<8x512xf32> to vector<8x128xf32>
    %258 = arith.negf %257 : vector<8x128xf32>
    %259 = math.exp %258 : vector<8x128xf32>
    %cst_65 = arith.constant 1.000000e+00 : f32
    %260 = vector.broadcast %cst_65 : f32 to vector<8x128xf32>
    %261 = arith.addf %260, %259 : vector<8x128xf32>
    %262 = arith.divf %260, %261 : vector<8x128xf32>
    %263 = vector.extract_strided_slice %256 {offsets = [0, 128], sizes = [8, 128], strides = [1, 1]} : vector<8x512xf32> to vector<8x128xf32>
    %264 = arith.negf %263 : vector<8x128xf32>
    %265 = math.exp %264 : vector<8x128xf32>
    %cst_66 = arith.constant 1.000000e+00 : f32
    %266 = vector.broadcast %cst_66 : f32 to vector<8x128xf32>
    %267 = arith.addf %266, %265 : vector<8x128xf32>
    %268 = arith.divf %266, %267 : vector<8x128xf32>
    %269 = vector.extract_strided_slice %256 {offsets = [0, 256], sizes = [8, 128], strides = [1, 1]} : vector<8x512xf32> to vector<8x128xf32>
    %270 = math.tanh %269 : vector<8x128xf32>
    %271 = vector.extract_strided_slice %256 {offsets = [0, 384], sizes = [8, 128], strides = [1, 1]} : vector<8x512xf32> to vector<8x128xf32>
    %272 = arith.negf %271 : vector<8x128xf32>
    %273 = math.exp %272 : vector<8x128xf32>
    %cst_67 = arith.constant 1.000000e+00 : f32
    %274 = vector.broadcast %cst_67 : f32 to vector<8x128xf32>
    %275 = arith.addf %274, %273 : vector<8x128xf32>
    %276 = arith.divf %274, %275 : vector<8x128xf32>
    %277 = arith.mulf %268, %244 : vector<8x128xf32>
    %278 = arith.mulf %262, %270 : vector<8x128xf32>
    %279 = arith.addf %277, %278 : vector<8x128xf32>
    %280 = math.tanh %279 : vector<8x128xf32>
    %281 = arith.mulf %276, %280 : vector<8x128xf32>
    %282 = arith.index_cast %c7_i32 : i32 to index
    %c0_68 = arith.constant 0 : index
    %c0_69 = arith.constant 0 : index
    %283 = vector.load %arg6[%282, %c0_68, %c0_69] : memref<8x8x128xf32, #tpu.memory_space<vmem>>, vector<1x8x128xf32>
    %284 = vector.shape_cast %283 : vector<1x8x128xf32> to vector<8x128xf32>
    %285 = vector.shape_cast %281 : vector<8x128xf32> to vector<1x8x128xf32>
    tpu.vector_store %arg6[%282, %c0_68, %c0_69], %285 {strides = array<i32>} : memref<8x8x128xf32, #tpu.memory_space<vmem>>, vector<1x8x128xf32>,
    %c8_i32 = arith.constant 8 : i32
    %c0_70 = arith.constant 0 : index
    %c0_71 = arith.constant 0 : index
    %286 = vector.load %arg9[%c0_70, %c0_71] : memref<8x128xf32, #tpu.memory_space<vmem>>, vector<8x128xf32>
    tpu.vector_store %arg9[%c0_70, %c0_71], %281 {strides = array<i32>} : memref<8x128xf32, #tpu.memory_space<vmem>>, vector<8x128xf32>,
    %c0_72 = arith.constant 0 : index
    %c0_73 = arith.constant 0 : index
    %287 = vector.load %arg10[%c0_72, %c0_73] : memref<8x128xf32, #tpu.memory_space<vmem>>, vector<8x128xf32>
    tpu.vector_store %arg10[%c0_72, %c0_73], %279 {strides = array<i32>} : memref<8x128xf32, #tpu.memory_space<vmem>>, vector<8x128xf32>,
    %c0_i32_74 = arith.constant 0 : i32
    %288 = arith.cmpi eq, %arg1, %c0_i32_74 : i32
    %289 = arith.extui %288 : i1 to i32
    %c0_i32_75 = arith.constant 0 : i32
    %290 = arith.cmpi ne, %289, %c0_i32_75 : i32
    scf.if %290 {
      %c0_76 = arith.constant 0 : index
      %c0_77 = arith.constant 0 : index
      %291 = vector.load %arg9[%c0_76, %c0_77] : memref<8x128xf32, #tpu.memory_space<vmem>>, vector<8x128xf32>
      %c0_78 = arith.constant 0 : index
      %c0_79 = arith.constant 0 : index
      %292 = vector.load %arg7[%c0_78, %c0_79] : memref<8x128xf32, #tpu.memory_space<vmem>>, vector<8x128xf32>
      tpu.vector_store %arg7[%c0_78, %c0_79], %291 {strides = array<i32>} : memref<8x128xf32, #tpu.memory_space<vmem>>, vector<8x128xf32>,
      %c0_80 = arith.constant 0 : index
      %c0_81 = arith.constant 0 : index
      %293 = vector.load %arg10[%c0_80, %c0_81] : memref<8x128xf32, #tpu.memory_space<vmem>>, vector<8x128xf32>
      %c0_82 = arith.constant 0 : index
      %c0_83 = arith.constant 0 : index
      %294 = vector.load %arg8[%c0_82, %c0_83] : memref<8x128xf32, #tpu.memory_space<vmem>>, vector<8x128xf32>
      tpu.vector_store %arg8[%c0_82, %c0_83], %293 {strides = array<i32>} : memref<8x128xf32, #tpu.memory_space<vmem>>, vector<8x128xf32>,
    } else {
    }
    return
  }
  func.func @transform_0(%arg0: i32, %arg1: i32) -> (i32, i32, i32) {
    %c0_i32 = arith.constant 0 : i32
    %c0_i32_0 = arith.constant 0 : i32
    return %arg1, %arg0, %c0_i32 : i32, i32, i32
  }
  func.func @transform_1(%arg0: i32, %arg1: i32) -> (i32, i32) {
    %c0_i32 = arith.constant 0 : i32
    %c0_i32_0 = arith.constant 0 : i32
    %c0_i32_1 = arith.constant 0 : i32
    return %c0_i32, %c0_i32_0 : i32, i32
  }
  func.func @transform_2(%arg0: i32, %arg1: i32) -> (i32, i32) {
    %c0_i32 = arith.constant 0 : i32
    %c0_i32_0 = arith.constant 0 : i32
    return %arg0, %c0_i32 : i32, i32
  }
  func.func @transform_3(%arg0: i32, %arg1: i32) -> (i32, i32) {
    %c0_i32 = arith.constant 0 : i32
    %c0_i32_0 = arith.constant 0 : i32
    return %arg0, %c0_i32 : i32, i32
  }
  func.func @transform_4(%arg0: i32, %arg1: i32) -> (i32, i32, i32) {
    %c0_i32 = arith.constant 0 : i32
    %c0_i32_0 = arith.constant 0 : i32
    return %arg1, %arg0, %c0_i32 : i32, i32, i32
  }
  func.func @transform_5(%arg0: i32, %arg1: i32) -> (i32, i32) {
    %c0_i32 = arith.constant 0 : i32
    %c0_i32_0 = arith.constant 0 : i32
    return %arg0, %c0_i32 : i32, i32
  }
  func.func @transform_6(%arg0: i32, %arg1: i32) -> (i32, i32) {
    %c0_i32 = arith.constant 0 : i32
    %c0_i32_0 = arith.constant 0 : i32
    return %arg0, %c0_i32 : i32, i32
  }
}

module attributes {stable_mosaic.version = 11 : i64} {
  func.func @_matmul_bias_kernel(%arg0: i32, %arg1: i32, %arg2: i32, %arg3: memref<64x128xbf16, #tpu.memory_space<vmem>>, %arg4: memref<128x128xbf16, #tpu.memory_space<vmem>>, %arg5: memref<1x128xf32, #tpu.memory_space<vmem>>, %arg6: memref<64x128xf32, #tpu.memory_space<vmem>>, %arg7: memref<64x128xf32, #tpu.memory_space<vmem>>) attributes {dimension_semantics = [#tpu.dimension_semantics<parallel>, #tpu.dimension_semantics<parallel>, #tpu.dimension_semantics<arbitrary>], iteration_bounds = array<i64: 1, 1, 1>, scalar_prefetch = 0 : i64, scratch_operands = 1 : i64, tpu.core_type = #tpu.core_type<tc>, window_params = [{transform_indices = @transform_0, window_bounds = array<i64: 64, 128>}, {transform_indices = @transform_1, window_bounds = array<i64: 128, 128>}, {transform_indices = @transform_2, window_bounds = array<i64: 1, 128>}, {transform_indices = @transform_3, window_bounds = array<i64: 64, 128>}]} {
    %c0_i32 = arith.constant 0 : i32
    %0 = arith.cmpi eq, %arg2, %c0_i32 : i32
    %1 = arith.extui %0 : i1 to i32
    %c0_i32_0 = arith.constant 0 : i32
    %2 = arith.cmpi ne, %1, %c0_i32_0 : i32
    scf.if %2 {
      %cst_10 = arith.constant 0.000000e+00 : f32
      %12 = vector.broadcast %cst_10 : f32 to vector<64x128xf32>
      %c0_11 = arith.constant 0 : index
      %c0_12 = arith.constant 0 : index
      %13 = vector.load %arg7[%c0_11, %c0_12] : memref<64x128xf32, #tpu.memory_space<vmem>>, vector<64x128xf32>
      tpu.vector_store %arg7[%c0_11, %c0_12], %12 {strides = array<i32>} : memref<64x128xf32, #tpu.memory_space<vmem>>, vector<64x128xf32>,
    } else {
    }
    %c0 = arith.constant 0 : index
    %c0_1 = arith.constant 0 : index
    %3 = vector.load %arg7[%c0, %c0_1] : memref<64x128xf32, #tpu.memory_space<vmem>>, vector<64x128xf32>
    %c0_2 = arith.constant 0 : index
    %c0_3 = arith.constant 0 : index
    %4 = vector.load %arg3[%c0_2, %c0_3] : memref<64x128xbf16, #tpu.memory_space<vmem>>, vector<64x128xbf16>
    %c0_4 = arith.constant 0 : index
    %c0_5 = arith.constant 0 : index
    %5 = vector.load %arg4[%c0_4, %c0_5] : memref<128x128xbf16, #tpu.memory_space<vmem>>, vector<128x128xbf16>
    %cst = arith.constant dense<0.000000e+00> : vector<64x128xf32>
    %6 = tpu.matmul %4, %5, %cst {dimension_numbers = #tpu.dot_dimension_numbers<[1], [0], [0], [1], [0, 0, 1, 1], [], []>} : vector<64x128xbf16>, vector<128x128xbf16>, vector<64x128xf32> -> vector<64x128xf32>
    %7 = arith.addf %3, %6 : vector<64x128xf32>
    %c0_6 = arith.constant 0 : index
    %c0_7 = arith.constant 0 : index
    %8 = vector.load %arg7[%c0_6, %c0_7] : memref<64x128xf32, #tpu.memory_space<vmem>>, vector<64x128xf32>
    tpu.vector_store %arg7[%c0_6, %c0_7], %7 {strides = array<i32>} : memref<64x128xf32, #tpu.memory_space<vmem>>, vector<64x128xf32>,
    %c0_i32_8 = arith.constant 0 : i32
    %9 = arith.cmpi eq, %arg2, %c0_i32_8 : i32
    %10 = arith.extui %9 : i1 to i32
    %c0_i32_9 = arith.constant 0 : i32
    %11 = arith.cmpi ne, %10, %c0_i32_9 : i32
    scf.if %11 {
      %c0_10 = arith.constant 0 : index
      %c0_11 = arith.constant 0 : index
      %12 = vector.load %arg7[%c0_10, %c0_11] : memref<64x128xf32, #tpu.memory_space<vmem>>, vector<64x128xf32>
      %c0_12 = arith.constant 0 : index
      %c0_13 = arith.constant 0 : index
      %13 = vector.load %arg5[%c0_12, %c0_13] : memref<1x128xf32, #tpu.memory_space<vmem>>, vector<1x128xf32>
      %14 = vector.broadcast %13 : vector<1x128xf32> to vector<64x128xf32>
      %15 = arith.addf %12, %14 : vector<64x128xf32>
      %c0_14 = arith.constant 0 : index
      %c0_15 = arith.constant 0 : index
      %16 = vector.load %arg6[%c0_14, %c0_15] : memref<64x128xf32, #tpu.memory_space<vmem>>, vector<64x128xf32>
      tpu.vector_store %arg6[%c0_14, %c0_15], %15 {strides = array<i32>} : memref<64x128xf32, #tpu.memory_space<vmem>>, vector<64x128xf32>,
    } else {
    }
    return
  }
  func.func @transform_0(%arg0: i32, %arg1: i32, %arg2: i32) -> (i32, i32) {
    %c0_i32 = arith.constant 0 : i32
    return %arg0, %arg2 : i32, i32
  }
  func.func @transform_1(%arg0: i32, %arg1: i32, %arg2: i32) -> (i32, i32) {
    %c0_i32 = arith.constant 0 : i32
    return %arg2, %arg1 : i32, i32
  }
  func.func @transform_2(%arg0: i32, %arg1: i32, %arg2: i32) -> (i32, i32) {
    %c0_i32 = arith.constant 0 : i32
    %c0_i32_0 = arith.constant 0 : i32
    return %c0_i32, %arg1 : i32, i32
  }
  func.func @transform_3(%arg0: i32, %arg1: i32, %arg2: i32) -> (i32, i32) {
    %c0_i32 = arith.constant 0 : i32
    return %arg0, %arg1 : i32, i32
  }
}

</mosaic_0001>

<bundles_post_ra>
// kernel: decoder_forward.5
= control target key start
LH: loop header
LB: loop body
LE: loop exit
PB: predicated region body
PF: predicated region fallthrough
CT: control target
= control target key end

     0   :  { %s378_s1 = inlined_call_operand.vmem [shape: bf16[128,128], index: 1, kind: input, shape index: {}]   ;;  %s379_s2 = inlined_call_operand.vmem [shape: f32[1,128], index: 2, kind: input, shape index: {}]   ;;  %s380_s0 = inlined_call_operand.vmem [shape: bf16[64,128], index: 0, kind: input, shape index: {}]   ;;  %s381_s3 = inlined_call_operand.vmem [shape: f32[64,128], index: 3, kind: output, shape index: {}]  }
   0x1   :  { %v269_v0 = vld [vmem:[%s378_s1 + $0x38] sm:$0xff]  ;;  %v268_v1 = vld [vmem:[%s378_s1 + $0x30] sm:$0xff]  ;;  %v267_v2 = vld [vmem:[%s378_s1 + $0x28] sm:$0xff] }
   0x2   :  { %130 = vmatpush.bf16.msra.mxu0 %v269_v0  ;;  %270 = vmatpush.bf16.msra.mxu1 %v269_v0  ;;  %v266_v3 = vld [vmem:[%s378_s1 + $0x20] sm:$0xff]  ;;  %v265_v4 = vld [vmem:[%s378_s1 + $0x18] sm:$0xff]  ;;  %v264_v5 = vld [vmem:[%s378_s1 + $0x10] sm:$0xff] }
   0x3   :  { %271 = vmatpush.bf16.msra.mxu2 %v269_v0  ;;  %272 = vmatpush.bf16.msra.mxu3 %v269_v0  ;;  %v263_v6 = vld [vmem:[%s378_s1 + $0x8] sm:$0xff]  ;;  %v262_v7 = vld [vmem:[%s378_s1] sm:$0xff]  ;;  %v260_v10 = vld [vmem:[%s380_s0 + $0x10] sm:$0xff] }
   0x4   :  { %v258_v8 = vld [vmem:[%s380_s0] sm:$0xff]  ;;  %v259_v9 = vld [vmem:[%s380_s0 + $0x8] sm:$0xff]  ;;  %v261_v11 = vld [vmem:[%s380_s0 + $0x18] sm:$0xff] }
   0x5   :  { %v294_v12 = vld [vmem:[%s379_s2] ss:$0 sm:$0xff] }
   0x6   :  { %131 = vmatpush.bf16.msra.mxu0 %v268_v1  ;;  %273 = vmatpush.bf16.msra.mxu1 %v268_v1 }
   0x7   :  { %274 = vmatpush.bf16.msra.mxu2 %v268_v1  ;;  %275 = vmatpush.bf16.msra.mxu3 %v268_v1 }
   0xa   :  { %132 = vmatpush.bf16.msra.mxu0 %v267_v2  ;;  %276 = vmatpush.bf16.msra.mxu1 %v267_v2 }
   0xb   :  { %277 = vmatpush.bf16.msra.mxu2 %v267_v2  ;;  %278 = vmatpush.bf16.msra.mxu3 %v267_v2 }
   0xe   :  { %133 = vmatpush.bf16.msra.mxu0 %v266_v3  ;;  %279 = vmatpush.bf16.msra.mxu1 %v266_v3 }
   0xf   :  { %280 = vmatpush.bf16.msra.mxu2 %v266_v3  ;;  %281 = vmatpush.bf16.msra.mxu3 %v266_v3 }
  0x12   :  { %134 = vmatpush.bf16.msra.mxu0 %v265_v4  ;;  %282 = vmatpush.bf16.msra.mxu1 %v265_v4 }
  0x13   :  { %283 = vmatpush.bf16.msra.mxu2 %v265_v4  ;;  %284 = vmatpush.bf16.msra.mxu3 %v265_v4 }
  0x16   :  { %135 = vmatpush.bf16.msra.mxu0 %v264_v5  ;;  %285 = vmatpush.bf16.msra.mxu1 %v264_v5 }
  0x17   :  { %286 = vmatpush.bf16.msra.mxu2 %v264_v5  ;;  %287 = vmatpush.bf16.msra.mxu3 %v264_v5 }
  0x1a   :  { %136 = vmatpush.bf16.msra.mxu0 %v263_v6  ;;  %288 = vmatpush.bf16.msra.mxu1 %v263_v6 }
  0x1b   :  { %289 = vmatpush.bf16.msra.mxu2 %v263_v6  ;;  %290 = vmatpush.bf16.msra.mxu3 %v263_v6 }
  0x1e   :  { %137 = vmatpush.bf16.msra.mxu0 %v262_v7  ;;  %291 = vmatpush.bf16.msra.mxu1 %v262_v7 }
  0x1f   :  { %292 = vmatpush.bf16.msra.mxu2 %v262_v7  ;;  %293 = vmatpush.bf16.msra.mxu3 %v262_v7 }
  0x21   :  { %138 = vmatmul.bf16.vlgmr.msra.gmra.mxu0 %v258_v8  ;;  %143 = vmatmul.bf16.vlgmr.msra.gmra.mxu1 %v259_v9 }
  0x22   :  { %148 = vmatmul.bf16.vlgmr.msra.gmra.mxu2 %v260_v10  ;;  %153 = vmatmul.bf16.vlgmr.msra.gmra.mxu3 %v261_v11 }
  0x9e   :  { %v139_v13 = vpop.f32.mrf.mxu0  ;;  %v144_v14 = vpop.f32.mrf.mxu1 }
  0x9f   :  { %v190_v15 = vadd.f32 %v294_v12, %v139_v13  ;;  %v192_v16 = vadd.f32 %v294_v12, %v144_v14 }
  0xa1   :  { %198 = vst [vmem:[%s381_s3] sm:$0xff] %v190_v15 }
  0xa2   :  { %200 = vst [vmem:[%s381_s3 + $0x10] sm:$0xff] %v192_v16 }
  0xa5   :  { %v149_v17 = vpop.f32.mrf.mxu2  ;;  %v154_v18 = vpop.f32.mrf.mxu3 }
  0xa6   :  { %v194_v19 = vadd.f32 %v294_v12, %v149_v17  ;;  %v196_v20 = vadd.f32 %v294_v12, %v154_v18  ;;  %v141_v21 = vpop.f32.mrf.mxu0  ;;  %v146_v22 = vpop.f32.mrf.mxu1 }
  0xa7   :  { %v191_v23 = vadd.f32 %v294_v12, %v141_v21  ;;  %v193_v24 = vadd.f32 %v294_v12, %v146_v22 }
  0xa8   :  { %202 = vst [vmem:[%s381_s3 + $0x20] sm:$0xff] %v194_v19 }
  0xa9   :  { %204 = vst [vmem:[%s381_s3 + $0x30] sm:$0xff] %v196_v20 }
  0xaa   :  { %199 = vst [vmem:[%s381_s3 + $0x8] sm:$0xff] %v191_v23 }
  0xab   :  { %201 = vst [vmem:[%s381_s3 + $0x18] sm:$0xff] %v193_v24 }
  0xad   :  { %v151_v25 = vpop.f32.mrf.mxu2  ;;  %v156_v26 = vpop.f32.mrf.mxu3 }
  0xae   :  { %v195_v27 = vadd.f32 %v294_v12, %v151_v25  ;;  %v197_v28 = vadd.f32 %v294_v12, %v156_v26 }
  0xb0   :  { %203 = vst [vmem:[%s381_s3 + $0x28] sm:$0xff] %v195_v27 }
  0xb1   :  { %205 = vst [vmem:[%s381_s3 + $0x38] sm:$0xff] %v197_v28 }

// kernel: decoder_forward.3
= control target key start
LH: loop header
LB: loop body
LE: loop exit
PB: predicated region body
PF: predicated region fallthrough
CT: control target
= control target key end

     0   :  { %s1142_s1 = inlined_call_operand.vmem [shape: bf16[128,512], index: 1, kind: input, shape index: {}]   ;;  %s1143_s0 = inlined_call_operand.vmem [shape: bf16[64,128], index: 0, kind: input, shape index: {}]   ;;  %s1144_s2 = inlined_call_operand.vmem [shape: f32[1,512], index: 2, kind: input, shape index: {}]   ;;  %s1145_s3 = inlined_call_operand.vmem [shape: f32[64,512], index: 3, kind: output, shape index: {}]  }
   0x1   :  { %v729_v0 = vld [vmem:[%s1142_s1 + $0xe0] sm:$0xf]  ;;  %v777_v1 = vld [vmem:[%s1142_s1 + $0xec] sm:$0xf0]  ;;  %v775_v2 = vld [vmem:[%s1142_s1 + $0xe4] sm:$0xf] }
   0x2   :  { %v730_v3 = vor.u32 %v777_v1, %v729_v0  ;;  %v731_v4 = vld [vmem:[%s1142_s1 + $0xf0] sm:$0xf0]  ;;  %v737_v5 = vld [vmem:[%s1142_s1 + $0xe8] sm:$0xf]  ;;  %v778_v6 = vld [vmem:[%s1142_s1 + $0xf4] sm:$0xf0] }
   0x3   :  { %v734_v7 = vor.u32 %v775_v2, %v731_v4  ;;  %v738_v8 = vor.u32 %v778_v6, %v737_v5  ;;  %v776_v9 = vld [vmem:[%s1142_s1 + $0xec] sm:$0xf]  ;;  %v739_v10 = vld [vmem:[%s1142_s1 + $0xf8] sm:$0xf0]  ;;  %v713_v11 = vld [vmem:[%s1142_s1 + $0xc0] sm:$0xf] }
   0x4   :  { %306 = vmatpush.bf16.msra.mxu0 %v730_v3  ;;  %v742_v12 = vor.u32 %v776_v9, %v739_v10  ;;  %v773_v13 = vld [vmem:[%s1142_s1 + $0xcc] sm:$0xf0]  ;;  %v771_v14 = vld [vmem:[%s1142_s1 + $0xc4] sm:$0xf]  ;;  %v715_v15 = vld [vmem:[%s1142_s1 + $0xd0] sm:$0xf0] }
   0x5   :  { %335 = vmatpush.bf16.msra.mxu1 %v734_v7  ;;  %364 = vmatpush.bf16.msra.mxu2 %v738_v8  ;;  %v714_v16 = vor.u32 %v773_v13, %v713_v11  ;;  %v718_v17 = vor.u32 %v771_v14, %v715_v15  ;;  %v721_v18 = vld [vmem:[%s1142_s1 + $0xc8] sm:$0xf]  ;;  %v774_v19 = vld [vmem:[%s1142_s1 + $0xd4] sm:$0xf0]  ;;  %v772_v20 = vld [vmem:[%s1142_s1 + $0xcc] sm:$0xf] }
   0x6   :  { %393 = vmatpush.bf16.msra.mxu3 %v742_v12  ;;  %v722_v21 = vor.u32 %v774_v19, %v721_v18  ;;  %v723_v22 = vld [vmem:[%s1142_s1 + $0xd8] sm:$0xf0]  ;;  %v697_v23 = vld [vmem:[%s1142_s1 + $0xa0] sm:$0xf]  ;;  %v769_v24 = vld [vmem:[%s1142_s1 + $0xac] sm:$0xf0] }
   0x7   :  { %v726_v25 = vor.u32 %v772_v20, %v723_v22  ;;  %v767_v26 = vld [vmem:[%s1142_s1 + $0xa4] sm:$0xf]  ;;  %v699_v27 = vld [vmem:[%s1142_s1 + $0xb0] sm:$0xf0]  ;;  %v705_v28 = vld [vmem:[%s1142_s1 + $0xa8] sm:$0xf]  ;;  %v698_v29 = vor.u32 %v769_v24, %v697_v23 }
   0x8   :  { %307 = vmatpush.bf16.msra.mxu0 %v714_v16  ;;  %v770_v30 = vld [vmem:[%s1142_s1 + $0xb4] sm:$0xf0]  ;;  %v768_v31 = vld [vmem:[%s1142_s1 + $0xac] sm:$0xf]  ;;  %v707_v32 = vld [vmem:[%s1142_s1 + $0xb8] sm:$0xf0]  ;;  %v702_v33 = vor.u32 %v767_v26, %v699_v27 }
   0x9   :  { %336 = vmatpush.bf16.msra.mxu1 %v718_v17  ;;  %365 = vmatpush.bf16.msra.mxu2 %v722_v21  ;;  %v706_v34 = vor.u32 %v770_v30, %v705_v28  ;;  %v681_v35 = vld [vmem:[%s1142_s1 + $0x80] sm:$0xf]  ;;  %v765_v36 = vld [vmem:[%s1142_s1 + $0x8c] sm:$0xf0]  ;;  %v763_v37 = vld [vmem:[%s1142_s1 + $0x84] sm:$0xf]  ;;  %v710_v38 = vor.u32 %v768_v31, %v707_v32 }
   0xa   :  { %394 = vmatpush.bf16.msra.mxu3 %v726_v25  ;;  %v683_v39 = vld [vmem:[%s1142_s1 + $0x90] sm:$0xf0]  ;;  %v689_v40 = vld [vmem:[%s1142_s1 + $0x88] sm:$0xf]  ;;  %v766_v41 = vld [vmem:[%s1142_s1 + $0x94] sm:$0xf0]  ;;  %v682_v44 = vor.u32 %v765_v36, %v681_v35 }
   0xb   :  { %v764_v42 = vld [vmem:[%s1142_s1 + $0x8c] sm:$0xf]  ;;  %v691_v43 = vld [vmem:[%s1142_s1 + $0x98] sm:$0xf0]  ;;  %v686_v45 = vor.u32 %v763_v37, %v683_v39  ;;  %v690_v46 = vor.u32 %v766_v41, %v689_v40  ;;  %v665_v47 = vld [vmem:[%s1142_s1 + $0x60] sm:$0xf] }
   0xc   :  { %308 = vmatpush.bf16.msra.mxu0 %v698_v29  ;;  %v761_v48 = vld [vmem:[%s1142_s1 + $0x6c] sm:$0xf0]  ;;  %v759_v49 = vld [vmem:[%s1142_s1 + $0x64] sm:$0xf]  ;;  %v694_v50 = vor.u32 %v764_v42, %v691_v43  ;;  %v667_v51 = vld [vmem:[%s1142_s1 + $0x70] sm:$0xf0] }
   0xd   :  { %337 = vmatpush.bf16.msra.mxu1 %v702_v33  ;;  %366 = vmatpush.bf16.msra.mxu2 %v706_v34  ;;  %v673_v52 = vld [vmem:[%s1142_s1 + $0x68] sm:$0xf]  ;;  %v762_v53 = vld [vmem:[%s1142_s1 + $0x74] sm:$0xf0]  ;;  %v760_v54 = vld [vmem:[%s1142_s1 + $0x6c] sm:$0xf]  ;;  %v666_v56 = vor.u32 %v761_v48, %v665_v47  ;;  %v670_v57 = vor.u32 %v759_v49, %v667_v51 }
   0xe   :  { %395 = vmatpush.bf16.msra.mxu3 %v710_v38  ;;  %v675_v55 = vld [vmem:[%s1142_s1 + $0x78] sm:$0xf0]  ;;  %v674_v58 = vor.u32 %v762_v53, %v673_v52  ;;  %v649_v59 = vld [vmem:[%s1142_s1 + $0x40] sm:$0xf]  ;;  %v757_v60 = vld [vmem:[%s1142_s1 + $0x4c] sm:$0xf0] }
   0xf   :  { %v755_v61 = vld [vmem:[%s1142_s1 + $0x44] sm:$0xf]  ;;  %v678_v62 = vor.u32 %v760_v54, %v675_v55  ;;  %v651_v63 = vld [vmem:[%s1142_s1 + $0x50] sm:$0xf0]  ;;  %v657_v0 = vld [vmem:[%s1142_s1 + $0x48] sm:$0xf]  ;;  %v650_v4 = vor.u32 %v757_v60, %v649_v59 }
  0x10   :  { %309 = vmatpush.bf16.msra.mxu0 %v682_v44  ;;  %v758_v1 = vld [vmem:[%s1142_s1 + $0x54] sm:$0xf0]  ;;  %v756_v2 = vld [vmem:[%s1142_s1 + $0x4c] sm:$0xf]  ;;  %v659_v3 = vld [vmem:[%s1142_s1 + $0x58] sm:$0xf0]  ;;  %v654_v5 = vor.u32 %v755_v61, %v651_v63 }
  0x11   :  { %338 = vmatpush.bf16.msra.mxu1 %v686_v45  ;;  %367 = vmatpush.bf16.msra.mxu2 %v690_v46  ;;  %v658_v6 = vor.u32 %v758_v1, %v657_v0  ;;  %v633_v7 = vld [vmem:[%s1142_s1 + $0x20] sm:$0xf]  ;;  %v753_v8 = vld [vmem:[%s1142_s1 + $0x2c] sm:$0xf0]  ;;  %v751_v9 = vld [vmem:[%s1142_s1 + $0x24] sm:$0xf]  ;;  %v662_v10 = vor.u32 %v756_v2, %v659_v3 }
  0x12   :  { %396 = vmatpush.bf16.msra.mxu3 %v694_v50  ;;  %v635_v11 = vld [vmem:[%s1142_s1 + $0x30] sm:$0xf0]  ;;  %v641_v12 = vld [vmem:[%s1142_s1 + $0x28] sm:$0xf]  ;;  %v754_v13 = vld [vmem:[%s1142_s1 + $0x34] sm:$0xf0]  ;;  %v634_v16 = vor.u32 %v753_v8, %v633_v7 }
  0x13   :  { %v752_v14 = vld [vmem:[%s1142_s1 + $0x2c] sm:$0xf]  ;;  %v643_v15 = vld [vmem:[%s1142_s1 + $0x38] sm:$0xf0]  ;;  %v638_v17 = vor.u32 %v751_v9, %v635_v11  ;;  %v642_v18 = vor.u32 %v754_v13, %v641_v12  ;;  %v617_v19 = vld [vmem:[%s1142_s1] sm:$0xf] }
  0x14   :  { %310 = vmatpush.bf16.msra.mxu0 %v666_v56  ;;  %v749_v20 = vld [vmem:[%s1142_s1 + $0xc] sm:$0xf0]  ;;  %v747_v21 = vld [vmem:[%s1142_s1 + $0x4] sm:$0xf]  ;;  %v646_v22 = vor.u32 %v752_v14, %v643_v15  ;;  %v619_v23 = vld [vmem:[%s1142_s1 + $0x10] sm:$0xf0] }
  0x15   :  { %339 = vmatpush.bf16.msra.mxu1 %v670_v57  ;;  %368 = vmatpush.bf16.msra.mxu2 %v674_v58  ;;  %v625_v24 = vld [vmem:[%s1142_s1 + $0x8] sm:$0xf]  ;;  %v750_v25 = vld [vmem:[%s1142_s1 + $0x14] sm:$0xf0]  ;;  %v748_v26 = vld [vmem:[%s1142_s1 + $0xc] sm:$0xf]  ;;  %v618_v28 = vor.u32 %v749_v20, %v617_v19  ;;  %v622_v29 = vor.u32 %v747_v21, %v619_v23 }
  0x16   :  { %397 = vmatpush.bf16.msra.mxu3 %v678_v62  ;;  %v627_v27 = vld [vmem:[%s1142_s1 + $0x18] sm:$0xf0]  ;;  %v626_v30 = vor.u32 %v750_v25, %v625_v24  ;;  %v743_v32 = vld [vmem:[%s1143_s0] sm:$0xff]  ;;  %v744_v33 = vld [vmem:[%s1143_s0 + $0x8] sm:$0xff] }
  0x17   :  { %v630_v31 = vor.u32 %v748_v26, %v627_v27  ;;  %v745_v34 = vld [vmem:[%s1143_s0 + $0x10] sm:$0xff]  ;;  %v746_v35 = vld [vmem:[%s1143_s0 + $0x18] sm:$0xff]  ;;  %v521_v36 = vld [vmem:[%s1144_s2] sm:$0xf] }
  0x18   :  { %311 = vmatpush.bf16.msra.mxu0 %v650_v4  ;;  %v1006_v37 = vperm.slane %v521_v36, 0  ;;  %v1008_v38 = vperm.slane %v521_v36, 1  ;;  %v1018_v43 = vperm.slane %v521_v36, 2  ;;  %v1020_v44 = vperm.slane %v521_v36, 3 }
  0x19   :  { %340 = vmatpush.bf16.msra.mxu1 %v654_v5  ;;  %369 = vmatpush.bf16.msra.mxu2 %v658_v6 }
  0x1a   :  { %398 = vmatpush.bf16.msra.mxu3 %v662_v10 }
  0x1c   :  { %312 = vmatpush.bf16.msra.mxu0 %v634_v16 }
  0x1d   :  { %341 = vmatpush.bf16.msra.mxu1 %v638_v17  ;;  %370 = vmatpush.bf16.msra.mxu2 %v642_v18 }
  0x1e   :  { %399 = vmatpush.bf16.msra.mxu3 %v646_v22 }
  0x20   :  { %313 = vmatpush.bf16.msra.mxu0 %v618_v28 }
  0x21   :  { %342 = vmatpush.bf16.msra.mxu1 %v622_v29  ;;  %371 = vmatpush.bf16.msra.mxu2 %v626_v30 }
  0x22   :  { %400 = vmatpush.bf16.msra.mxu3 %v630_v31 }
  0x23   :  { %314 = vmatmul.bf16.vlgmr.msra.gmra.mxu0 %v743_v32 }
  0x24   :  { %343 = vmatmul.bf16.vlgmr.msra.gmra.mxu1 %v743_v32  ;;  %372 = vmatmul.bf16.vlgmr.msra.gmra.mxu2 %v743_v32 }
  0x25   :  { %401 = vmatmul.bf16.vlgmr.msra.gmra.mxu3 %v743_v32 }
  0x33   :  { %319 = vmatmul.bf16.gmra.mxu0 %v744_v33 }
  0x34   :  { %348 = vmatmul.bf16.gmra.mxu1 %v744_v33  ;;  %377 = vmatmul.bf16.gmra.mxu2 %v744_v33 }
  0x35   :  { %406 = vmatmul.bf16.gmra.mxu3 %v744_v33 }
  0x43   :  { %324 = vmatmul.bf16.gmra.mxu0 %v745_v34 }
  0x44   :  { %353 = vmatmul.bf16.gmra.mxu1 %v745_v34  ;;  %382 = vmatmul.bf16.gmra.mxu2 %v745_v34 }
  0x45   :  { %411 = vmatmul.bf16.gmra.mxu3 %v745_v34 }
  0x53   :  { %329 = vmatmul.bf16.gmra.mxu0 %v746_v35 }
  0x54   :  { %358 = vmatmul.bf16.gmra.mxu1 %v746_v35  ;;  %387 = vmatmul.bf16.gmra.mxu2 %v746_v35 }
  0x55   :  { %416 = vmatmul.bf16.gmra.mxu3 %v746_v35 }
  0xa0   :  { %v315_v39 = vpop.f32.mrf.mxu0 }
  0xa1   :  { %v531_v40 = vadd.f32 %v1006_v37, %v315_v39  ;;  %v344_v41 = vpop.f32.mrf.mxu1 }
  0xa2   :  { %v532_v42 = vadd.f32 %v1008_v38, %v344_v41 }
  0xa3   :  { %563 = vst [vmem:[%s1145_s3] sm:$0xff] %v531_v40 }
  0xa4   :  { %564 = vst [vmem:[%s1145_s3 + $0x8] sm:$0xff] %v532_v42 }
  0xa7   :  { %v373_v45 = vpop.f32.mrf.mxu2 }
  0xa8   :  { %v533_v46 = vadd.f32 %v1018_v43, %v373_v45  ;;  %v402_v47 = vpop.f32.mrf.mxu3  ;;  %v317_v48 = vpop.f32.mrf.mxu0 }
  0xa9   :  { %v534_v49 = vadd.f32 %v1020_v44, %v402_v47  ;;  %v535_v50 = vadd.f32 %v1006_v37, %v317_v48  ;;  %v346_v51 = vpop.f32.mrf.mxu1 }
  0xaa   :  { %565 = vst [vmem:[%s1145_s3 + $0x10] sm:$0xff] %v533_v46  ;;  %v536_v52 = vadd.f32 %v1008_v38, %v346_v51 }
  0xab   :  { %566 = vst [vmem:[%s1145_s3 + $0x18] sm:$0xff] %v534_v49 }
  0xac   :  { %567 = vst [vmem:[%s1145_s3 + $0x20] sm:$0xff] %v535_v50 }
  0xad   :  { %568 = vst [vmem:[%s1145_s3 + $0x28] sm:$0xff] %v536_v52 }
  0xaf   :  { %v375_v53 = vpop.f32.mrf.mxu2 }
  0xb0   :  { %v537_v54 = vadd.f32 %v1018_v43, %v375_v53  ;;  %v404_v55 = vpop.f32.mrf.mxu3  ;;  %v320_v56 = vpop.f32.mrf.mxu0 }
  0xb1   :  { %v538_v57 = vadd.f32 %v1020_v44, %v404_v55  ;;  %v539_v58 = vadd.f32 %v1006_v37, %v320_v56  ;;  %v349_v59 = vpop.f32.mrf.mxu1 }
  0xb2   :  { %569 = vst [vmem:[%s1145_s3 + $0x30] sm:$0xff] %v537_v54  ;;  %v540_v60 = vadd.f32 %v1008_v38, %v349_v59 }
  0xb3   :  { %570 = vst [vmem:[%s1145_s3 + $0x38] sm:$0xff] %v538_v57 }
  0xb4   :  { %571 = vst [vmem:[%s1145_s3 + $0x40] sm:$0xff] %v539_v58 }
  0xb5   :  { %572 = vst [vmem:[%s1145_s3 + $0x48] sm:$0xff] %v540_v60 }
  0xb7   :  { %v378_v61 = vpop.f32.mrf.mxu2 }
  0xb8   :  { %v541_v62 = vadd.f32 %v1018_v43, %v378_v61  ;;  %v407_v63 = vpop.f32.mrf.mxu3  ;;  %v322_v0 = vpop.f32.mrf.mxu0 }
  0xb9   :  { %v542_v1 = vadd.f32 %v1020_v44, %v407_v63  ;;  %v543_v2 = vadd.f32 %v1006_v37, %v322_v0  ;;  %v351_v3 = vpop.f32.mrf.mxu1 }
  0xba   :  { %573 = vst [vmem:[%s1145_s3 + $0x50] sm:$0xff] %v541_v62  ;;  %v544_v4 = vadd.f32 %v1008_v38, %v351_v3 }
  0xbb   :  { %574 = vst [vmem:[%s1145_s3 + $0x58] sm:$0xff] %v542_v1 }
  0xbc   :  { %575 = vst [vmem:[%s1145_s3 + $0x60] sm:$0xff] %v543_v2 }
  0xbd   :  { %576 = vst [vmem:[%s1145_s3 + $0x68] sm:$0xff] %v544_v4 }
  0xbf   :  { %v380_v5 = vpop.f32.mrf.mxu2 }
  0xc0   :  { %v545_v6 = vadd.f32 %v1018_v43, %v380_v5  ;;  %v409_v7 = vpop.f32.mrf.mxu3  ;;  %v325_v8 = vpop.f32.mrf.mxu0 }
  0xc1   :  { %v546_v9 = vadd.f32 %v1020_v44, %v409_v7  ;;  %v547_v10 = vadd.f32 %v1006_v37, %v325_v8  ;;  %v354_v11 = vpop.f32.mrf.mxu1 }
  0xc2   :  { %577 = vst [vmem:[%s1145_s3 + $0x70] sm:$0xff] %v545_v6  ;;  %v548_v12 = vadd.f32 %v1008_v38, %v354_v11 }
  0xc3   :  { %578 = vst [vmem:[%s1145_s3 + $0x78] sm:$0xff] %v546_v9 }
  0xc4   :  { %579 = vst [vmem:[%s1145_s3 + $0x80] sm:$0xff] %v547_v10 }
  0xc5   :  { %580 = vst [vmem:[%s1145_s3 + $0x88] sm:$0xff] %v548_v12 }
  0xc7   :  { %v383_v13 = vpop.f32.mrf.mxu2 }
  0xc8   :  { %v549_v14 = vadd.f32 %v1018_v43, %v383_v13  ;;  %v412_v15 = vpop.f32.mrf.mxu3  ;;  %v327_v16 = vpop.f32.mrf.mxu0 }
  0xc9   :  { %v550_v17 = vadd.f32 %v1020_v44, %v412_v15  ;;  %v551_v18 = vadd.f32 %v1006_v37, %v327_v16  ;;  %v356_v19 = vpop.f32.mrf.mxu1 }
  0xca   :  { %581 = vst [vmem:[%s1145_s3 + $0x90] sm:$0xff] %v549_v14  ;;  %v552_v20 = vadd.f32 %v1008_v38, %v356_v19 }
  0xcb   :  { %582 = vst [vmem:[%s1145_s3 + $0x98] sm:$0xff] %v550_v17 }
  0xcc   :  { %583 = vst [vmem:[%s1145_s3 + $0xa0] sm:$0xff] %v551_v18 }
  0xcd   :  { %584 = vst [vmem:[%s1145_s3 + $0xa8] sm:$0xff] %v552_v20 }
  0xcf   :  { %v385_v21 = vpop.f32.mrf.mxu2 }
  0xd0   :  { %v553_v22 = vadd.f32 %v1018_v43, %v385_v21  ;;  %v414_v23 = vpop.f32.mrf.mxu3  ;;  %v330_v24 = vpop.f32.mrf.mxu0 }
  0xd1   :  { %v554_v25 = vadd.f32 %v1020_v44, %v414_v23  ;;  %v555_v26 = vadd.f32 %v1006_v37, %v330_v24  ;;  %v359_v27 = vpop.f32.mrf.mxu1 }
  0xd2   :  { %585 = vst [vmem:[%s1145_s3 + $0xb0] sm:$0xff] %v553_v22  ;;  %v556_v28 = vadd.f32 %v1008_v38, %v359_v27 }
  0xd3   :  { %586 = vst [vmem:[%s1145_s3 + $0xb8] sm:$0xff] %v554_v25 }
  0xd4   :  { %587 = vst [vmem:[%s1145_s3 + $0xc0] sm:$0xff] %v555_v26 }
  0xd5   :  { %588 = vst [vmem:[%s1145_s3 + $0xc8] sm:$0xff] %v556_v28 }
  0xd7   :  { %v388_v29 = vpop.f32.mrf.mxu2 }
  0xd8   :  { %v557_v30 = vadd.f32 %v1018_v43, %v388_v29  ;;  %v417_v31 = vpop.f32.mrf.mxu3  ;;  %v332_v32 = vpop.f32.mrf.mxu0 }
  0xd9   :  { %v558_v33 = vadd.f32 %v1020_v44, %v417_v31  ;;  %v559_v34 = vadd.f32 %v1006_v37, %v332_v32  ;;  %v361_v35 = vpop.f32.mrf.mxu1 }
  0xda   :  { %589 = vst [vmem:[%s1145_s3 + $0xd0] sm:$0xff] %v557_v30  ;;  %v560_v36 = vadd.f32 %v1008_v38, %v361_v35 }
  0xdb   :  { %590 = vst [vmem:[%s1145_s3 + $0xd8] sm:$0xff] %v558_v33 }
  0xdc   :  { %591 = vst [vmem:[%s1145_s3 + $0xe0] sm:$0xff] %v559_v34 }
  0xdd   :  { %592 = vst [vmem:[%s1145_s3 + $0xe8] sm:$0xff] %v560_v36 }
  0xdf   :  { %v390_v37 = vpop.f32.mrf.mxu2 }
  0xe0   :  { %v561_v39 = vadd.f32 %v1018_v43, %v390_v37  ;;  %v419_v40 = vpop.f32.mrf.mxu3 }
  0xe1   :  { %v562_v41 = vadd.f32 %v1020_v44, %v419_v40 }
  0xe2   :  { %593 = vst [vmem:[%s1145_s3 + $0xf0] sm:$0xff] %v561_v39 }
  0xe3   :  { %594 = vst [vmem:[%s1145_s3 + $0xf8] sm:$0xff] %v562_v41 }

// kernel: decoder_forward.4
= control target key start
LH: loop header
LB: loop body
LE: loop exit
PB: predicated region body
PF: predicated region fallthrough
CT: control target
= control target key end

     0   :  { %s2311_s1 = inlined_call_operand.vmem [shape: bf16[128,512], index: 1, kind: input, shape index: {}]   ;;  %s2312_s2 = inlined_call_operand.vmem [shape: f32[8,128], index: 2, kind: input, shape index: {}]   ;;  %s2313_s0 = inlined_call_operand.vmem [shape: f32[8,8,512], index: 0, kind: input, shape index: {}]   ;;  %s2314_s3 = inlined_call_operand.vmem [shape: f32[8,128], index: 3, kind: input, shape index: {}]   ;;  %s2315_s4 = inlined_call_operand.vmem [shape: f32[8,8,128], index: 4, kind: output, shape index: {0}]   ;;  %s2316_s6 = inlined_call_operand.vmem [shape: f32[8,128], index: 6, kind: output, shape index: {2}]   ;;  %s2317_s5 = inlined_call_operand.vmem [shape: f32[8,128], index: 5, kind: output, shape index: {1}]  }
   0x1   :  { %v1371_v0 = vld [vmem:[%s2311_s1 + $0xe0] sm:$0xf]  ;;  %v1474_v1 = vld [vmem:[%s2311_s1 + $0xec] sm:$0xf0]  ;;  %v1472_v2 = vld [vmem:[%s2311_s1 + $0xe4] sm:$0xf] }
   0x2   :  { %v1648_v3 = vor.u32 %v1474_v1, %v1371_v0  ;;  %v1373_v4 = vld [vmem:[%s2311_s1 + $0xf0] sm:$0xf0]  ;;  %v1473_v5 = vld [vmem:[%s2311_s1 + $0xec] sm:$0xf]  ;;  %v1381_v6 = vld [vmem:[%s2311_s1 + $0xf8] sm:$0xf0] }
   0x3   :  { %v1659_v7 = vor.u32 %v1472_v2, %v1373_v4  ;;  %v1661_v8 = vor.u32 %v1473_v5, %v1381_v6  ;;  %v1355_v9 = vld [vmem:[%s2311_s1 + $0xc0] sm:$0xf]  ;;  %v1470_v10 = vld [vmem:[%s2311_s1 + $0xcc] sm:$0xf0]  ;;  %v1468_v11 = vld [vmem:[%s2311_s1 + $0xc4] sm:$0xf] }
   0x4   :  { %227 = vmatpush.bf16.msra.mxu0 %v1648_v3  ;;  %v1673_v12 = vor.u32 %v1470_v10, %v1355_v9  ;;  %v1357_v13 = vld [vmem:[%s2311_s1 + $0xd0] sm:$0xf0]  ;;  %v1469_v14 = vld [vmem:[%s2311_s1 + $0xcc] sm:$0xf]  ;;  %v1365_v15 = vld [vmem:[%s2311_s1 + $0xd8] sm:$0xf0] }
   0x5   :  { %240 = vmatpush.bf16.msra.mxu1 %v1659_v7  ;;  %266 = vmatpush.bf16.msra.mxu3 %v1661_v8  ;;  %v1686_v16 = vor.u32 %v1468_v11, %v1357_v13  ;;  %v1688_v17 = vor.u32 %v1469_v14, %v1365_v15  ;;  %v1379_v18 = vld [vmem:[%s2311_s1 + $0xe8] sm:$0xf]  ;;  %v1475_v19 = vld [vmem:[%s2311_s1 + $0xf4] sm:$0xf0]  ;;  %v1339_v20 = vld [vmem:[%s2311_s1 + $0xa0] sm:$0xf] }
   0x6   :  { %v1699_v21 = vor.u32 %v1475_v19, %v1379_v18  ;;  %v1466_v22 = vld [vmem:[%s2311_s1 + $0xac] sm:$0xf0]  ;;  %v1464_v23 = vld [vmem:[%s2311_s1 + $0xa4] sm:$0xf]  ;;  %v1341_v24 = vld [vmem:[%s2311_s1 + $0xb0] sm:$0xf0] }
   0x7   :  { %v1465_v25 = vld [vmem:[%s2311_s1 + $0xac] sm:$0xf]  ;;  %v1349_v26 = vld [vmem:[%s2311_s1 + $0xb8] sm:$0xf0]  ;;  %v1363_v27 = vld [vmem:[%s2311_s1 + $0xc8] sm:$0xf]  ;;  %v1721_v28 = vor.u32 %v1466_v22, %v1339_v20  ;;  %v1734_v32 = vor.u32 %v1464_v23, %v1341_v24 }
   0x8   :  { %228 = vmatpush.bf16.msra.mxu0 %v1673_v12  ;;  %253 = vmatpush.bf16.msra.mxu2 %v1699_v21  ;;  %v1471_v29 = vld [vmem:[%s2311_s1 + $0xd4] sm:$0xf0]  ;;  %v1323_v30 = vld [vmem:[%s2311_s1 + $0x80] sm:$0xf]  ;;  %v1462_v31 = vld [vmem:[%s2311_s1 + $0x8c] sm:$0xf0]  ;;  %v1736_v33 = vor.u32 %v1465_v25, %v1349_v26 }
   0x9   :  { %241 = vmatpush.bf16.msra.mxu1 %v1686_v16  ;;  %267 = vmatpush.bf16.msra.mxu3 %v1688_v17  ;;  %v1738_v34 = vor.u32 %v1471_v29, %v1363_v27  ;;  %v1460_v35 = vld [vmem:[%s2311_s1 + $0x84] sm:$0xf]  ;;  %v1325_v36 = vld [vmem:[%s2311_s1 + $0x90] sm:$0xf0]  ;;  %v1461_v37 = vld [vmem:[%s2311_s1 + $0x8c] sm:$0xf]  ;;  %v1760_v41 = vor.u32 %v1462_v31, %v1323_v30 }
   0xa   :  { %v1333_v38 = vld [vmem:[%s2311_s1 + $0x98] sm:$0xf0]  ;;  %v1347_v39 = vld [vmem:[%s2311_s1 + $0xa8] sm:$0xf]  ;;  %v1467_v40 = vld [vmem:[%s2311_s1 + $0xb4] sm:$0xf0]  ;;  %v1772_v45 = vor.u32 %v1460_v35, %v1325_v36 }
   0xb   :  { %v1762_v42 = vor.u32 %v1467_v40, %v1347_v39  ;;  %v1307_v43 = vld [vmem:[%s2311_s1 + $0x60] sm:$0xf]  ;;  %v1458_v44 = vld [vmem:[%s2311_s1 + $0x6c] sm:$0xf0]  ;;  %v1774_v46 = vor.u32 %v1461_v37, %v1333_v38  ;;  %v1456_v47 = vld [vmem:[%s2311_s1 + $0x64] sm:$0xf] }
   0xc   :  { %229 = vmatpush.bf16.msra.mxu0 %v1721_v28  ;;  %254 = vmatpush.bf16.msra.mxu2 %v1738_v34  ;;  %v1331_v48 = vld [vmem:[%s2311_s1 + $0x88] sm:$0xf]  ;;  %v1463_v49 = vld [vmem:[%s2311_s1 + $0x94] sm:$0xf0]  ;;  %v1309_v50 = vld [vmem:[%s2311_s1 + $0x70] sm:$0xf0]  ;;  %v1796_v53 = vor.u32 %v1458_v44, %v1307_v43 }
   0xd   :  { %242 = vmatpush.bf16.msra.mxu1 %v1734_v32  ;;  %268 = vmatpush.bf16.msra.mxu3 %v1736_v33  ;;  %v1457_v51 = vld [vmem:[%s2311_s1 + $0x6c] sm:$0xf]  ;;  %v1317_v52 = vld [vmem:[%s2311_s1 + $0x78] sm:$0xf0]  ;;  %v1798_v54 = vor.u32 %v1463_v49, %v1331_v48  ;;  %v1291_v55 = vld [vmem:[%s2311_s1 + $0x40] sm:$0xf]  ;;  %v1808_v57 = vor.u32 %v1456_v47, %v1309_v50 }
   0xe   :  { %v1454_v56 = vld [vmem:[%s2311_s1 + $0x4c] sm:$0xf0]  ;;  %v1810_v58 = vor.u32 %v1457_v51, %v1317_v52  ;;  %v1452_v59 = vld [vmem:[%s2311_s1 + $0x44] sm:$0xf]  ;;  %v1315_v60 = vld [vmem:[%s2311_s1 + $0x68] sm:$0xf] }
   0xf   :  { %v1459_v61 = vld [vmem:[%s2311_s1 + $0x74] sm:$0xf0]  ;;  %v1293_v62 = vld [vmem:[%s2311_s1 + $0x50] sm:$0xf0]  ;;  %v1453_v63 = vld [vmem:[%s2311_s1 + $0x4c] sm:$0xf]  ;;  %v1832_v1 = vor.u32 %v1454_v56, %v1291_v55 }
  0x10   :  { %230 = vmatpush.bf16.msra.mxu0 %v1760_v41  ;;  %255 = vmatpush.bf16.msra.mxu2 %v1762_v42  ;;  %v1301_v0 = vld [vmem:[%s2311_s1 + $0x58] sm:$0xf0]  ;;  %v1834_v2 = vor.u32 %v1459_v61, %v1315_v60  ;;  %v1275_v4 = vld [vmem:[%s2311_s1 + $0x20] sm:$0xf]  ;;  %v1450_v5 = vld [vmem:[%s2311_s1 + $0x2c] sm:$0xf0]  ;;  %v1844_v6 = vor.u32 %v1452_v59, %v1293_v62 }
  0x11   :  { %243 = vmatpush.bf16.msra.mxu1 %v1772_v45  ;;  %269 = vmatpush.bf16.msra.mxu3 %v1774_v46  ;;  %v1846_v9 = vor.u32 %v1453_v63, %v1301_v0  ;;  %v1448_v10 = vld [vmem:[%s2311_s1 + $0x24] sm:$0xf]  ;;  %v1299_v11 = vld [vmem:[%s2311_s1 + $0x48] sm:$0xf]  ;;  %v1455_v13 = vld [vmem:[%s2311_s1 + $0x54] sm:$0xf0]  ;;  %v1868_v19 = vor.u32 %v1450_v5, %v1275_v4 }
  0x12   :  { %v1277_v14 = vld [vmem:[%s2311_s1 + $0x30] sm:$0xf0]  ;;  %v1449_v15 = vld [vmem:[%s2311_s1 + $0x2c] sm:$0xf]  ;;  %v1285_v18 = vld [vmem:[%s2311_s1 + $0x38] sm:$0xf0]  ;;  %v1870_v20 = vor.u32 %v1455_v13, %v1299_v11 }
  0x13   :  { %v1259_v22 = vld [vmem:[%s2311_s1] sm:$0xf]  ;;  %v1446_v23 = vld [vmem:[%s2311_s1 + $0xc] sm:$0xf0]  ;;  %v1880_v24 = vor.u32 %v1448_v10, %v1277_v14  ;;  %v1882_v25 = vor.u32 %v1449_v15, %v1285_v18  ;;  %v1444_v26 = vld [vmem:[%s2311_s1 + $0x4] sm:$0xf] }
  0x14   :  { %231 = vmatpush.bf16.msra.mxu0 %v1796_v53  ;;  %256 = vmatpush.bf16.msra.mxu2 %v1798_v54  ;;  %v1283_v27 = vld [vmem:[%s2311_s1 + $0x28] sm:$0xf]  ;;  %v1451_v29 = vld [vmem:[%s2311_s1 + $0x34] sm:$0xf0]  ;;  %v1261_v30 = vld [vmem:[%s2311_s1 + $0x10] sm:$0xf0]  ;;  %v1904_v36 = vor.u32 %v1446_v23, %v1259_v22 }
  0x15   :  { %244 = vmatpush.bf16.msra.mxu1 %v1808_v57  ;;  %270 = vmatpush.bf16.msra.mxu3 %v1810_v58  ;;  %v1445_v31 = vld [vmem:[%s2311_s1 + $0xc] sm:$0xf]  ;;  %v1269_v35 = vld [vmem:[%s2311_s1 + $0x18] sm:$0xf0]  ;;  %v24_v37 = vld [vmem:[%s2312_s2] sm:$0xff]  ;;  %v1909_v38 = vor.u32 %v1451_v29, %v1283_v27  ;;  %v1913_v39 = vor.u32 %v1444_v26, %v1261_v30 }
  0x16   :  { %v1915_v40 = vor.u32 %v1445_v31, %v1269_v35  ;;  %v1267_v43 = vld [vmem:[%s2311_s1 + $0x8] sm:$0xf]  ;;  %v1447_v44 = vld [vmem:[%s2311_s1 + $0x14] sm:$0xf0]  ;;  %v66_v47 = vpack.c.bf16 %v24_v37, %v24_v37  ;;  %v62_v49 = vld [vmem:[%s2313_s0] sm:$0xff] }
  0x17   :  { %v1927_v48 = vor.u32 %v1447_v44, %v1267_v43  ;;  %v63_v50 = vld [vmem:[%s2313_s0 + $0x8] sm:$0xff]  ;;  %v65_v61 = vld [vmem:[%s2313_s0 + $0x18] sm:$0xff]  ;;  %v64_v18 = vld [vmem:[%s2313_s0 + $0x10] sm:$0xff] }
  0x18   :  { %232 = vmatpush.bf16.msra.mxu0 %v1832_v1  ;;  %257 = vmatpush.bf16.msra.mxu2 %v1834_v2 }
  0x19   :  { %245 = vmatpush.bf16.msra.mxu1 %v1844_v6  ;;  %271 = vmatpush.bf16.msra.mxu3 %v1846_v9 }
  0x1c   :  { %233 = vmatpush.bf16.msra.mxu0 %v1868_v19  ;;  %258 = vmatpush.bf16.msra.mxu2 %v1870_v20 }
  0x1d   :  { %246 = vmatpush.bf16.msra.mxu1 %v1880_v24  ;;  %272 = vmatpush.bf16.msra.mxu3 %v1882_v25 }
  0x20   :  { %234 = vmatpush.bf16.msra.mxu0 %v1904_v36  ;;  %259 = vmatpush.bf16.msra.mxu2 %v1909_v38 }
  0x21   :  { %247 = vmatpush.bf16.msra.mxu1 %v1913_v39  ;;  %273 = vmatpush.bf16.msra.mxu3 %v1915_v40 }
  0x23   :  { %235 = vmatmul.bf16.vlgmr.msra.gmra.mxu0 %v66_v47 }
  0x24   :  { %353 = vmatpush.bf16.msrb.mxu0 %v1648_v3  ;;  %248 = vmatmul.bf16.vlgmr.msra.gmra.mxu1 %v66_v47 }
  0x25   :  { %366 = vmatpush.bf16.msrb.mxu1 %v1659_v7  ;;  %392 = vmatpush.bf16.msrb.mxu3 %v1661_v8 }
  0x26   :  { %274 = vmatmul.bf16.vlgmr.msra.gmra.mxu3 %v66_v47  ;;  %260 = vmatpush.bf16.msra.mxu2 %v1927_v48 }
  0x28   :  { %354 = vmatpush.bf16.msrb.mxu0 %v1673_v12 }
  0x29   :  { %367 = vmatpush.bf16.msrb.mxu1 %v1686_v16  ;;  %393 = vmatpush.bf16.msrb.mxu3 %v1688_v17 }
  0x2a   :  { %379 = vmatpush.bf16.msrb.mxu2 %v1699_v21 }
  0x2b   :  { %261 = vmatmul.bf16.vlgmr.msra.gmra.mxu2 %v66_v47 }
  0x2c   :  { %355 = vmatpush.bf16.msrb.mxu0 %v1721_v28 }
  0x2d   :  { %368 = vmatpush.bf16.msrb.mxu1 %v1734_v32  ;;  %394 = vmatpush.bf16.msrb.mxu3 %v1736_v33 }
  0x2e   :  { %380 = vmatpush.bf16.msrb.mxu2 %v1738_v34 }
  0x30   :  { %356 = vmatpush.bf16.msrb.mxu0 %v1760_v41 }
  0x31   :  { %369 = vmatpush.bf16.msrb.mxu1 %v1772_v45  ;;  %395 = vmatpush.bf16.msrb.mxu3 %v1774_v46 }
  0x32   :  { %381 = vmatpush.bf16.msrb.mxu2 %v1762_v42 }
  0x34   :  { %357 = vmatpush.bf16.msrb.mxu0 %v1796_v53 }
  0x35   :  { %370 = vmatpush.bf16.msrb.mxu1 %v1808_v57  ;;  %396 = vmatpush.bf16.msrb.mxu3 %v1810_v58 }
  0x36   :  { %382 = vmatpush.bf16.msrb.mxu2 %v1798_v54 }
  0x38   :  { %358 = vmatpush.bf16.msrb.mxu0 %v1832_v1 }
  0x39   :  { %371 = vmatpush.bf16.msrb.mxu1 %v1844_v6  ;;  %397 = vmatpush.bf16.msrb.mxu3 %v1846_v9 }
  0x3a   :  { %383 = vmatpush.bf16.msrb.mxu2 %v1834_v2 }
  0x3c   :  { %359 = vmatpush.bf16.msrb.mxu0 %v1868_v19 }
  0x3d   :  { %372 = vmatpush.bf16.msrb.mxu1 %v1880_v24  ;;  %398 = vmatpush.bf16.msrb.mxu3 %v1882_v25 }
  0x3e   :  { %384 = vmatpush.bf16.msrb.mxu2 %v1870_v20 }
  0x40   :  { %360 = vmatpush.bf16.msrb.mxu0 %v1904_v36 }
  0x41   :  { %373 = vmatpush.bf16.msrb.mxu1 %v1913_v39  ;;  %399 = vmatpush.bf16.msrb.mxu3 %v1915_v40 }
  0x42   :  { %385 = vmatpush.bf16.msrb.mxu2 %v1909_v38 }
  0x44   :  { %480 = vmatpush.bf16.msra.mxu0 %v1648_v3 }
  0x45   :  { %493 = vmatpush.bf16.msra.mxu1 %v1659_v7  ;;  %519 = vmatpush.bf16.msra.mxu3 %v1661_v8 }
  0x46   :  { %386 = vmatpush.bf16.msrb.mxu2 %v1927_v48 }
  0x48   :  { %481 = vmatpush.bf16.msra.mxu0 %v1673_v12 }
  0x49   :  { %494 = vmatpush.bf16.msra.mxu1 %v1686_v16  ;;  %520 = vmatpush.bf16.msra.mxu3 %v1688_v17 }
  0x4a   :  { %506 = vmatpush.bf16.msra.mxu2 %v1699_v21 }
  0x4c   :  { %482 = vmatpush.bf16.msra.mxu0 %v1721_v28 }
  0x4d   :  { %495 = vmatpush.bf16.msra.mxu1 %v1734_v32  ;;  %521 = vmatpush.bf16.msra.mxu3 %v1736_v33 }
  0x4e   :  { %507 = vmatpush.bf16.msra.mxu2 %v1738_v34 }
  0x50   :  { %483 = vmatpush.bf16.msra.mxu0 %v1760_v41 }
  0x51   :  { %496 = vmatpush.bf16.msra.mxu1 %v1772_v45  ;;  %522 = vmatpush.bf16.msra.mxu3 %v1774_v46 }
  0x52   :  { %508 = vmatpush.bf16.msra.mxu2 %v1762_v42 }
  0x54   :  { %484 = vmatpush.bf16.msra.mxu0 %v1796_v53 }
  0x55   :  { %497 = vmatpush.bf16.msra.mxu1 %v1808_v57  ;;  %523 = vmatpush.bf16.msra.mxu3 %v1810_v58 }
  0x56   :  { %509 = vmatpush.bf16.msra.mxu2 %v1798_v54 }
  0x58   :  { %485 = vmatpush.bf16.msra.mxu0 %v1832_v1 }
  0x59   :  { %498 = vmatpush.bf16.msra.mxu1 %v1844_v6  ;;  %524 = vmatpush.bf16.msra.mxu3 %v1846_v9 }
  0x5a   :  { %510 = vmatpush.bf16.msra.mxu2 %v1834_v2 }
  0x5c   :  { %486 = vmatpush.bf16.msra.mxu0 %v1868_v19 }
  0x5d   :  { %499 = vmatpush.bf16.msra.mxu1 %v1880_v24  ;;  %525 = vmatpush.bf16.msra.mxu3 %v1882_v25 }
  0x5e   :  { %511 = vmatpush.bf16.msra.mxu2 %v1870_v20 }
  0x60   :  { %487 = vmatpush.bf16.msra.mxu0 %v1904_v36 }
  0x61   :  { %500 = vmatpush.bf16.msra.mxu1 %v1913_v39  ;;  %526 = vmatpush.bf16.msra.mxu3 %v1915_v40 }
  0x62   :  { %512 = vmatpush.bf16.msra.mxu2 %v1909_v38 }
  0x66   :  { %513 = vmatpush.bf16.msra.mxu2 %v1927_v48 }
  0xa0   :  { %v236_v51 = vpop.f32.mrf.mxu0 }
  0xa1   :  { %v279_v52 = vadd.f32 %v236_v51, %v62_v49  ;;  %v249_v55 = vpop.f32.mrf.mxu1 }
  0xa2   :  { %v280_v56 = vadd.f32 %v249_v55, %v63_v50 }
  0xa3   :  { %v1385_v59 = vmul.f32 -1.442695, %v279_v52 }
  0xa4   :  { %v1386_v60 = vmul.f32 -1.442695, %v280_v56 }
  0xa5   :  { %1476 = vpow2.f32 %v1385_v59 }
  0xa6   :  { %1478 = vpow2.f32 %v1386_v60 }
  0xa8   :  { %v238_v0 = vpop.f32.mrf.mxu0 }
  0xa9   :  { %v275_v62 = vpop.f32.mrf.mxu3  ;;  %v251_v4 = vpop.f32.mrf.mxu1 }
  0xaa   :  { %v282_v63 = vadd.f32 %v275_v62, %v65_v61  ;;  %v26_v4 = vld [vmem:[%s2314_s3] sm:$0xff] }
  0xab   :  { %v1477_v10 = vpop.eup %1476 }
  0xac   :  { %v1387_v5 = vmul.f32 -1.442695, %v282_v63  ;;  %v1479_v13 = vpop.eup %1478  ;;  %v286_v14 = vadd.f32 1.0, %v1477_v10 }
  0xad   :  { %v305_v15 = vadd.f32 1.0, %v1479_v13 }
  0xae   :  { %v262_v11 = vpop.f32.mrf.mxu2  ;;  %1480 = vpow2.f32 %v1387_v5  ;;  %v298_v47 = vand.u32 2147483648, %v286_v14  ;;  %v296_v51 = vand.u32 2147483647, %v286_v14  ;;  %vm292_vm2 = vweird.f32 %v286_v14 }
  0xaf   :  { %1482 = vrcp.f32 %v286_v14  ;;  %v281_v26 = vadd.f32 %v262_v11, %v64_v18  ;;  %v317_v49 = vand.u32 2147483648, %v305_v15  ;;  %v315_v55 = vand.u32 2147483647, %v305_v15 }
  0xb0   :  { %1484 = vrcp.f32 %v305_v15  ;;  %vm311_vm3 = vweird.f32 %v305_v15  ;;  %v299_v62 = vor.u32 1.1754944e-38, %v298_v47  ;;  %vm297_vm6 = vcmp.eq.f32.partialorder %v296_v51, 8.507059e+37 }
  0xb1   :  { %v277_v22 = vpop.f32.mrf.mxu3  ;;  %v318_v0 = vor.u32 1.1754944e-38, %v317_v49  ;;  %vm316_vm7 = vcmp.eq.f32.partialorder %v315_v55, 8.507059e+37  ;;  %v1389_v49 = vld [vmem:[%s2313_s0 + $0x28] sm:$0xff] }
  0xb4   :  { %v1481_v23 = vpop.eup %1480 }
  0xb5   :  { %v325_v27 = vadd.f32 1.0, %v1481_v23  ;;  %v1483_v30 = vpop.eup %1482 }
  0xb6   :  { %v264_v29 = vpop.f32.mrf.mxu2  ;;  %v1485_v31 = vpop.eup %1484  ;;  %v288_v35 = vmul.f32 %v1483_v30, %v286_v14  ;;  %vm293_vm0 = vweird.f32 %v1483_v30 }
  0xb7   :  { %1486 = vrcp.f32 %v325_v27  ;;  %v307_v37 = vmul.f32 %v1485_v31, %v305_v15  ;;  %vm312_vm1 = vweird.f32 %v1485_v31  ;;  %vm294_vm4 = vmor %vm292_vm2, %vm293_vm0  ;;  %v337_v29 = vand.u32 2147483648, %v325_v27 }
  0xb8   :  { %1488 = vtanh.f32 %v281_v26  ;;  %v289_v43 = vsub.f32 1.0, %v288_v35  ;;  %vm313_vm5 = vmor %vm311_vm3, %vm312_vm1  ;;  %vm331_vm9 = vweird.f32 %v325_v27  ;;  %v335_v35 = vand.u32 2147483647, %v325_v27 }
  0xb9   :  { %v308_v44 = vsub.f32 1.0, %v307_v37  ;;  %v338_v37 = vor.u32 1.1754944e-38, %v337_v29 }
  0xba   :  { %v290_v50 = vmul.f32 %v1483_v30, %v289_v43  ;;  %vm336_vm11 = vcmp.eq.f32.partialorder %v335_v35, 8.507059e+37 }
  0xbb   :  { %v309_v52 = vmul.f32 %v1485_v31, %v308_v44 }
  0xbc   :  { %v291_v59 = vadd.f32 %v1483_v30, %v290_v50 }
  0xbd   :  { %v1487_v56 = vpop.eup %1486  ;;  %v310_v63 = vadd.f32 %v1485_v31, %v309_v52 }
  0xbe   :  { %v1489_v60 = vpop.eup %1488  ;;  %v327_v61 = vmul.f32 %v1487_v56, %v325_v27  ;;  %v295_v5 = vsel %vm294_vm4, %v1483_v30, %v291_v59  ;;  %vm332_vm8 = vweird.f32 %v1487_v56  ;;  %v1388_v27 = vld [vmem:[%s2313_s0 + $0x20] sm:$0xff] }
  0xbf   :  { %v300_v11 = vsel %vm297_vm6, %v299_v62, %v295_v5  ;;  %v314_v13 = vsel %vm313_vm5, %v1485_v31, %v310_v63  ;;  %vm333_vm10 = vmor %vm331_vm9, %vm332_vm8 }
  0xc0   :  { %v328_v10 = vsub.f32 1.0, %v327_v61  ;;  %v319_v18 = vsel %vm316_vm7, %v318_v0, %v314_v13  ;;  %v342_v14 = vmul.f32 %v1489_v60, %v300_v11  ;;  %v1391_v60 = vld [vmem:[%s2313_s0 + $0x38] sm:$0xff] }
  0xc1   :  { %v341_v15 = vmul.f32 %v319_v18, %v26_v4 }
  0xc2   :  { %v329_v22 = vmul.f32 %v1487_v56, %v328_v10 }
  0xc3   :  { %v2009_v23 = vadd.f32 %v342_v14, %v341_v15  ;;  %v1390_v15 = vld [vmem:[%s2313_s0 + $0x30] sm:$0xff] }
  0xc4   :  { %v330_v26 = vadd.f32 %v1487_v56, %v329_v22 }
  0xc5   :  { %1490 = vtanh.f32 %v2009_v23 }
  0xc6   :  { %v334_v30 = vsel %vm333_vm10, %v1487_v56, %v330_v26 }
  0xc7   :  { %v339_v31 = vsel %vm336_vm11, %v338_v37, %v334_v30 }
  0xcb   :  { %v1491_v43 = vpop.eup %1490 }
  0xcc   :  { %v345_v44 = vmul.f32 %v1491_v43, %v339_v31 }
  0xce   :  { %346 = vst [vmem:[%s2315_s4] sm:$0xff] %v345_v44  ;;  %v352_v47 = vpack.c.bf16 %v345_v44, %v345_v44 }
  0xd0   :  { %361 = vmatmul.bf16.vlgmr.msrb.gmra.mxu0 %v352_v47  ;;  %374 = vmatmul.bf16.vlgmr.msrb.gmra.mxu1 %v352_v47 }
  0xd1   :  { %387 = vmatmul.bf16.vlgmr.msrb.gmra.mxu2 %v352_v47  ;;  %400 = vmatmul.bf16.vlgmr.msrb.gmra.mxu3 %v352_v47 }
  0xd2   :  { %607 = vmatpush.bf16.msrb.mxu0 %v1648_v3  ;;  %620 = vmatpush.bf16.msrb.mxu1 %v1659_v7 }
  0xd3   :  { %633 = vmatpush.bf16.msrb.mxu2 %v1699_v21  ;;  %646 = vmatpush.bf16.msrb.mxu3 %v1661_v8 }
  0xd6   :  { %608 = vmatpush.bf16.msrb.mxu0 %v1673_v12  ;;  %621 = vmatpush.bf16.msrb.mxu1 %v1686_v16 }
  0xd7   :  { %634 = vmatpush.bf16.msrb.mxu2 %v1738_v34  ;;  %647 = vmatpush.bf16.msrb.mxu3 %v1688_v17 }
  0xda   :  { %609 = vmatpush.bf16.msrb.mxu0 %v1721_v28  ;;  %622 = vmatpush.bf16.msrb.mxu1 %v1734_v32 }
  0xdb   :  { %635 = vmatpush.bf16.msrb.mxu2 %v1762_v42  ;;  %648 = vmatpush.bf16.msrb.mxu3 %v1736_v33 }
  0xde   :  { %610 = vmatpush.bf16.msrb.mxu0 %v1760_v41  ;;  %623 = vmatpush.bf16.msrb.mxu1 %v1772_v45 }
  0xdf   :  { %636 = vmatpush.bf16.msrb.mxu2 %v1798_v54  ;;  %649 = vmatpush.bf16.msrb.mxu3 %v1774_v46 }
  0xe2   :  { %611 = vmatpush.bf16.msrb.mxu0 %v1796_v53  ;;  %624 = vmatpush.bf16.msrb.mxu1 %v1808_v57 }
  0xe3   :  { %637 = vmatpush.bf16.msrb.mxu2 %v1834_v2  ;;  %650 = vmatpush.bf16.msrb.mxu3 %v1810_v58 }
  0xe6   :  { %612 = vmatpush.bf16.msrb.mxu0 %v1832_v1  ;;  %625 = vmatpush.bf16.msrb.mxu1 %v1844_v6 }
  0xe7   :  { %638 = vmatpush.bf16.msrb.mxu2 %v1870_v20  ;;  %651 = vmatpush.bf16.msrb.mxu3 %v1846_v9 }
  0xea   :  { %613 = vmatpush.bf16.msrb.mxu0 %v1868_v19  ;;  %626 = vmatpush.bf16.msrb.mxu1 %v1880_v24 }
  0xeb   :  { %639 = vmatpush.bf16.msrb.mxu2 %v1909_v38  ;;  %652 = vmatpush.bf16.msrb.mxu3 %v1882_v25 }
  0xee   :  { %614 = vmatpush.bf16.msrb.mxu0 %v1904_v36  ;;  %627 = vmatpush.bf16.msrb.mxu1 %v1913_v39 }
  0xef   :  { %640 = vmatpush.bf16.msrb.mxu2 %v1927_v48  ;;  %653 = vmatpush.bf16.msrb.mxu3 %v1915_v40 }
 0x14d   :  { %v362_v50 = vpop.f32.mrf.mxu0  ;;  %v375_v51 = vpop.f32.mrf.mxu1 }
 0x14e   :  { %v405_v52 = vadd.f32 %v1388_v27, %v362_v50  ;;  %v406_v55 = vadd.f32 %v1389_v49, %v375_v51 }
 0x150   :  { %v1392_v56 = vmul.f32 -1.442695, %v405_v52  ;;  %v1393_v59 = vmul.f32 -1.442695, %v406_v55 }
 0x152   :  { %1492 = vpow2.f32 %v1392_v56 }
 0x153   :  { %1494 = vpow2.f32 %v1393_v59 }
 0x154   :  { %v388_v61 = vpop.f32.mrf.mxu2  ;;  %v401_v62 = vpop.f32.mrf.mxu3 }
 0x155   :  { %v408_v63 = vadd.f32 %v1391_v60, %v401_v62  ;;  %v364_v0 = vpop.f32.mrf.mxu0  ;;  %v377_v4 = vpop.f32.mrf.mxu1  ;;  %v407_v30 = vadd.f32 %v1390_v15, %v388_v61 }
 0x157   :  { %v1394_v5 = vmul.f32 -1.442695, %v408_v63 }
 0x158   :  { %v1493_v10 = vpop.eup %1492 }
 0x159   :  { %v1495_v11 = vpop.eup %1494  ;;  %v412_v13 = vadd.f32 1.0, %v1493_v10  ;;  %1496 = vpow2.f32 %v1394_v5 }
 0x15a   :  { %v431_v18 = vadd.f32 1.0, %v1495_v11 }
 0x15b   :  { %1498 = vrcp.f32 %v412_v13  ;;  %v424_v27 = vand.u32 2147483648, %v412_v13  ;;  %v422_v51 = vand.u32 2147483647, %v412_v13  ;;  %vm418_vm14 = vweird.f32 %v412_v13 }
 0x15c   :  { %1500 = vrcp.f32 %v431_v18  ;;  %v390_v14 = vpop.f32.mrf.mxu2  ;;  %v403_v22 = vpop.f32.mrf.mxu3  ;;  %v443_v49 = vand.u32 2147483648, %v431_v18  ;;  %v441_v55 = vand.u32 2147483647, %v431_v18  ;;  %vm437_vm15 = vweird.f32 %v431_v18 }
 0x15d   :  { %v425_v60 = vor.u32 1.1754944e-38, %v424_v27  ;;  %vm423_vm2 = vcmp.eq.f32.partialorder %v422_v51, 8.507059e+37  ;;  %v1397_v27 = vld [vmem:[%s2313_s0 + $0x48] sm:$0xff] }
 0x15e   :  { %v444_v63 = vor.u32 1.1754944e-38, %v443_v49  ;;  %vm442_vm3 = vcmp.eq.f32.partialorder %v441_v55, 8.507059e+37 }
 0x15f   :  { %v1497_v26 = vpop.eup %1496 }
 0x160   :  { %v451_v29 = vadd.f32 1.0, %v1497_v26 }
 0x161   :  { %v1499_v35 = vpop.eup %1498 }
 0x162   :  { %v1501_v37 = vpop.eup %1500  ;;  %v414_v43 = vmul.f32 %v1499_v35, %v412_v13  ;;  %1502 = vrcp.f32 %v451_v29  ;;  %vm419_vm12 = vweird.f32 %v1499_v35  ;;  %vm457_vm5 = vweird.f32 %v451_v29 }
 0x163   :  { %v433_v31 = vmul.f32 %v1501_v37, %v431_v18  ;;  %1504 = vtanh.f32 %v407_v30  ;;  %vm438_vm13 = vweird.f32 %v1501_v37  ;;  %vm420_vm0 = vmor %vm418_vm14, %vm419_vm12  ;;  %v463_v30 = vand.u32 2147483648, %v451_v29 }
 0x164   :  { %v415_v44 = vsub.f32 1.0, %v414_v43  ;;  %vm439_vm1 = vmor %vm437_vm15, %vm438_vm13 }
 0x165   :  { %v434_v47 = vsub.f32 1.0, %v433_v31  ;;  %v464_v31 = vor.u32 1.1754944e-38, %v463_v30 }
 0x166   :  { %v416_v50 = vmul.f32 %v1499_v35, %v415_v44 }
 0x167   :  { %v435_v52 = vmul.f32 %v1501_v37, %v434_v47 }
 0x168   :  { %v1503_v56 = vpop.eup %1502  ;;  %v417_v59 = vadd.f32 %v1499_v35, %v416_v50 }
 0x169   :  { %v436_v61 = vadd.f32 %v1501_v37, %v435_v52  ;;  %v453_v62 = vmul.f32 %v1503_v56, %v451_v29  ;;  %v1505_v4 = vpop.eup %1504  ;;  %vm458_vm4 = vweird.f32 %v1503_v56 }
 0x16a   :  { %v421_v0 = vsel %vm420_vm0, %v1499_v35, %v417_v59  ;;  %v461_v35 = vand.u32 2147483647, %v451_v29  ;;  %vm459_vm6 = vmor %vm457_vm5, %vm458_vm4  ;;  %v1396_v29 = vld [vmem:[%s2313_s0 + $0x40] sm:$0xff]  ;;  %v1399_v59 = vld [vmem:[%s2313_s0 + $0x58] sm:$0xff] }
 0x16b   :  { %v426_v5 = vsel %vm423_vm2, %v425_v60, %v421_v0  ;;  %v440_v10 = vsel %vm439_vm1, %v1501_v37, %v436_v61  ;;  %v454_v11 = vsub.f32 1.0, %v453_v62 }
 0x16c   :  { %v445_v14 = vsel %vm442_vm3, %v444_v63, %v440_v10  ;;  %v468_v22 = vmul.f32 %v1505_v4, %v426_v5  ;;  %vm462_vm7 = vcmp.eq.f32.partialorder %v461_v35, 8.507059e+37 }
 0x16d   :  { %v467_v15 = vmul.f32 %v445_v14, %v2009_v23  ;;  %v455_v26 = vmul.f32 %v1503_v56, %v454_v11 }
 0x16f   :  { %v2060_v13 = vadd.f32 %v468_v22, %v467_v15  ;;  %v456_v18 = vadd.f32 %v1503_v56, %v455_v26  ;;  %v1398_v26 = vld [vmem:[%s2313_s0 + $0x50] sm:$0xff] }
 0x171   :  { %1506 = vtanh.f32 %v2060_v13  ;;  %v460_v43 = vsel %vm459_vm6, %v1503_v56, %v456_v18 }
 0x172   :  { %v465_v44 = vsel %vm462_vm7, %v464_v31, %v460_v43 }
 0x177   :  { %v1507_v37 = vpop.eup %1506 }
 0x178   :  { %v471_v47 = vmul.f32 %v1507_v37, %v465_v44 }
 0x17a   :  { %1395 = vst [vmem:[%s2315_s4 + $0x8] sm:$0xff] %v471_v47  ;;  %v479_v23 = vpack.c.bf16 %v471_v47, %v471_v47 }
 0x17c   :  { %488 = vmatmul.bf16.vlgmr.msra.gmra.mxu0 %v479_v23  ;;  %501 = vmatmul.bf16.vlgmr.msra.gmra.mxu1 %v479_v23 }
 0x17d   :  { %514 = vmatmul.bf16.vlgmr.msra.gmra.mxu2 %v479_v23  ;;  %527 = vmatmul.bf16.vlgmr.msra.gmra.mxu3 %v479_v23 }
 0x17e   :  { %734 = vmatpush.bf16.msra.mxu0 %v1648_v3  ;;  %747 = vmatpush.bf16.msra.mxu1 %v1659_v7 }
 0x17f   :  { %760 = vmatpush.bf16.msra.mxu2 %v1699_v21  ;;  %773 = vmatpush.bf16.msra.mxu3 %v1661_v8 }
 0x182   :  { %735 = vmatpush.bf16.msra.mxu0 %v1673_v12  ;;  %748 = vmatpush.bf16.msra.mxu1 %v1686_v16 }
 0x183   :  { %761 = vmatpush.bf16.msra.mxu2 %v1738_v34  ;;  %774 = vmatpush.bf16.msra.mxu3 %v1688_v17 }
 0x186   :  { %736 = vmatpush.bf16.msra.mxu0 %v1721_v28  ;;  %749 = vmatpush.bf16.msra.mxu1 %v1734_v32 }
 0x187   :  { %762 = vmatpush.bf16.msra.mxu2 %v1762_v42  ;;  %775 = vmatpush.bf16.msra.mxu3 %v1736_v33 }
 0x18a   :  { %737 = vmatpush.bf16.msra.mxu0 %v1760_v41  ;;  %750 = vmatpush.bf16.msra.mxu1 %v1772_v45 }
 0x18b   :  { %763 = vmatpush.bf16.msra.mxu2 %v1798_v54  ;;  %776 = vmatpush.bf16.msra.mxu3 %v1774_v46 }
 0x18e   :  { %738 = vmatpush.bf16.msra.mxu0 %v1796_v53  ;;  %751 = vmatpush.bf16.msra.mxu1 %v1808_v57 }
 0x18f   :  { %764 = vmatpush.bf16.msra.mxu2 %v1834_v2  ;;  %777 = vmatpush.bf16.msra.mxu3 %v1810_v58 }
 0x192   :  { %739 = vmatpush.bf16.msra.mxu0 %v1832_v1  ;;  %752 = vmatpush.bf16.msra.mxu1 %v1844_v6 }
 0x193   :  { %765 = vmatpush.bf16.msra.mxu2 %v1870_v20  ;;  %778 = vmatpush.bf16.msra.mxu3 %v1846_v9 }
 0x196   :  { %740 = vmatpush.bf16.msra.mxu0 %v1868_v19  ;;  %753 = vmatpush.bf16.msra.mxu1 %v1880_v24 }
 0x197   :  { %766 = vmatpush.bf16.msra.mxu2 %v1909_v38  ;;  %779 = vmatpush.bf16.msra.mxu3 %v1882_v25 }
 0x19a   :  { %741 = vmatpush.bf16.msra.mxu0 %v1904_v36  ;;  %754 = vmatpush.bf16.msra.mxu1 %v1913_v39 }
 0x19b   :  { %767 = vmatpush.bf16.msra.mxu2 %v1927_v48  ;;  %780 = vmatpush.bf16.msra.mxu3 %v1915_v40 }
 0x1f9   :  { %v489_v49 = vpop.f32.mrf.mxu0  ;;  %v502_v50 = vpop.f32.mrf.mxu1 }
 0x1fa   :  { %v532_v51 = vadd.f32 %v1396_v29, %v489_v49  ;;  %v533_v52 = vadd.f32 %v1397_v27, %v502_v50 }
 0x1fc   :  { %v1400_v55 = vmul.f32 -1.442695, %v532_v51  ;;  %v1401_v56 = vmul.f32 -1.442695, %v533_v52 }
 0x1fe   :  { %1508 = vpow2.f32 %v1400_v55 }
 0x1ff   :  { %1510 = vpow2.f32 %v1401_v56 }
 0x200   :  { %v515_v60 = vpop.f32.mrf.mxu2  ;;  %v528_v61 = vpop.f32.mrf.mxu3 }
 0x201   :  { %v535_v62 = vadd.f32 %v1399_v59, %v528_v61  ;;  %v491_v63 = vpop.f32.mrf.mxu0  ;;  %v504_v0 = vpop.f32.mrf.mxu1  ;;  %v534_v43 = vadd.f32 %v1398_v26, %v515_v60 }
 0x203   :  { %v1402_v4 = vmul.f32 -1.442695, %v535_v62 }
 0x204   :  { %v1509_v5 = vpop.eup %1508 }
 0x205   :  { %v1511_v10 = vpop.eup %1510  ;;  %v539_v11 = vadd.f32 1.0, %v1509_v5  ;;  %1512 = vpow2.f32 %v1402_v4 }
 0x206   :  { %v558_v14 = vadd.f32 1.0, %v1511_v10 }
 0x207   :  { %1514 = vrcp.f32 %v539_v11  ;;  %v551_v29 = vand.u32 2147483648, %v539_v11  ;;  %v549_v50 = vand.u32 2147483647, %v539_v11  ;;  %vm545_vm10 = vweird.f32 %v539_v11 }
 0x208   :  { %1516 = vrcp.f32 %v558_v14  ;;  %v517_v22 = vpop.f32.mrf.mxu2  ;;  %v530_v15 = vpop.f32.mrf.mxu3  ;;  %v570_v27 = vand.u32 2147483648, %v558_v14  ;;  %v568_v52 = vand.u32 2147483647, %v558_v14  ;;  %vm564_vm11 = vweird.f32 %v558_v14 }
 0x209   :  { %v552_v59 = vor.u32 1.1754944e-38, %v551_v29  ;;  %vm550_vm14 = vcmp.eq.f32.partialorder %v549_v50, 8.507059e+37  ;;  %v1405_v29 = vld [vmem:[%s2313_s0 + $0x68] sm:$0xff] }
 0x20a   :  { %v571_v62 = vor.u32 1.1754944e-38, %v570_v27  ;;  %vm569_vm15 = vcmp.eq.f32.partialorder %v568_v52, 8.507059e+37 }
 0x20b   :  { %v1513_v18 = vpop.eup %1512 }
 0x20c   :  { %v578_v30 = vadd.f32 1.0, %v1513_v18 }
 0x20d   :  { %v1515_v35 = vpop.eup %1514 }
 0x20e   :  { %v1517_v31 = vpop.eup %1516  ;;  %v541_v37 = vmul.f32 %v1515_v35, %v539_v11  ;;  %1518 = vrcp.f32 %v578_v30  ;;  %vm546_vm8 = vweird.f32 %v1515_v35  ;;  %vm584_vm1 = vweird.f32 %v578_v30 }
 0x20f   :  { %v560_v44 = vmul.f32 %v1517_v31, %v558_v14  ;;  %1520 = vtanh.f32 %v534_v43  ;;  %vm565_vm9 = vweird.f32 %v1517_v31  ;;  %vm547_vm12 = vmor %vm545_vm10, %vm546_vm8  ;;  %v590_v43 = vand.u32 2147483648, %v578_v30 }
 0x210   :  { %v542_v47 = vsub.f32 1.0, %v541_v37  ;;  %vm566_vm13 = vmor %vm564_vm11, %vm565_vm9 }
 0x211   :  { %v561_v23 = vsub.f32 1.0, %v560_v44  ;;  %v591_v44 = vor.u32 1.1754944e-38, %v590_v43 }
 0x212   :  { %v543_v49 = vmul.f32 %v1515_v35, %v542_v47 }
 0x213   :  { %v562_v51 = vmul.f32 %v1517_v31, %v561_v23 }
 0x214   :  { %v1519_v55 = vpop.eup %1518  ;;  %v544_v56 = vadd.f32 %v1515_v35, %v543_v49 }
 0x215   :  { %v563_v60 = vadd.f32 %v1517_v31, %v562_v51  ;;  %v580_v61 = vmul.f32 %v1519_v55, %v578_v30  ;;  %v1521_v0 = vpop.eup %1520  ;;  %vm585_vm0 = vweird.f32 %v1519_v55 }
 0x216   :  { %v548_v63 = vsel %vm547_vm12, %v1515_v35, %v544_v56  ;;  %v588_v35 = vand.u32 2147483647, %v578_v30  ;;  %vm586_vm2 = vmor %vm584_vm1, %vm585_vm0  ;;  %v1404_v30 = vld [vmem:[%s2313_s0 + $0x60] sm:$0xff]  ;;  %v1407_v56 = vld [vmem:[%s2313_s0 + $0x78] sm:$0xff] }
 0x217   :  { %v553_v4 = vsel %vm550_vm14, %v552_v59, %v548_v63  ;;  %v567_v5 = vsel %vm566_vm13, %v1517_v31, %v563_v60  ;;  %v581_v10 = vsub.f32 1.0, %v580_v61 }
 0x218   :  { %v572_v22 = vsel %vm569_vm15, %v571_v62, %v567_v5  ;;  %v595_v15 = vmul.f32 %v1521_v0, %v553_v4  ;;  %vm589_vm3 = vcmp.eq.f32.partialorder %v588_v35, 8.507059e+37 }
 0x219   :  { %v594_v26 = vmul.f32 %v572_v22, %v2060_v13  ;;  %v582_v18 = vmul.f32 %v1519_v55, %v581_v10 }
 0x21b   :  { %v2111_v11 = vadd.f32 %v595_v15, %v594_v26  ;;  %v583_v14 = vadd.f32 %v1519_v55, %v582_v18  ;;  %v1406_v18 = vld [vmem:[%s2313_s0 + $0x70] sm:$0xff] }
 0x21d   :  { %1522 = vtanh.f32 %v2111_v11  ;;  %v587_v37 = vsel %vm586_vm2, %v1519_v55, %v583_v14 }
 0x21e   :  { %v592_v47 = vsel %vm589_vm3, %v591_v44, %v587_v37 }
 0x223   :  { %v1523_v31 = vpop.eup %1522 }
 0x224   :  { %v598_v23 = vmul.f32 %v1523_v31, %v592_v47 }
 0x226   :  { %1403 = vst [vmem:[%s2315_s4 + $0x10] sm:$0xff] %v598_v23  ;;  %v606_v13 = vpack.c.bf16 %v598_v23, %v598_v23 }
 0x228   :  { %615 = vmatmul.bf16.vlgmr.msrb.gmra.mxu0 %v606_v13  ;;  %628 = vmatmul.bf16.vlgmr.msrb.gmra.mxu1 %v606_v13 }
 0x229   :  { %641 = vmatmul.bf16.vlgmr.msrb.gmra.mxu2 %v606_v13  ;;  %654 = vmatmul.bf16.vlgmr.msrb.gmra.mxu3 %v606_v13 }
 0x22a   :  { %861 = vmatpush.bf16.msrb.mxu0 %v1648_v3  ;;  %874 = vmatpush.bf16.msrb.mxu1 %v1659_v7 }
 0x22b   :  { %887 = vmatpush.bf16.msrb.mxu2 %v1699_v21  ;;  %900 = vmatpush.bf16.msrb.mxu3 %v1661_v8 }
 0x22e   :  { %862 = vmatpush.bf16.msrb.mxu0 %v1673_v12  ;;  %875 = vmatpush.bf16.msrb.mxu1 %v1686_v16 }
 0x22f   :  { %888 = vmatpush.bf16.msrb.mxu2 %v1738_v34  ;;  %901 = vmatpush.bf16.msrb.mxu3 %v1688_v17 }
 0x232   :  { %863 = vmatpush.bf16.msrb.mxu0 %v1721_v28  ;;  %876 = vmatpush.bf16.msrb.mxu1 %v1734_v32 }
 0x233   :  { %889 = vmatpush.bf16.msrb.mxu2 %v1762_v42  ;;  %902 = vmatpush.bf16.msrb.mxu3 %v1736_v33 }
 0x236   :  { %864 = vmatpush.bf16.msrb.mxu0 %v1760_v41  ;;  %877 = vmatpush.bf16.msrb.mxu1 %v1772_v45 }
 0x237   :  { %890 = vmatpush.bf16.msrb.mxu2 %v1798_v54  ;;  %903 = vmatpush.bf16.msrb.mxu3 %v1774_v46 }
 0x23a   :  { %865 = vmatpush.bf16.msrb.mxu0 %v1796_v53  ;;  %878 = vmatpush.bf16.msrb.mxu1 %v1808_v57 }
 0x23b   :  { %891 = vmatpush.bf16.msrb.mxu2 %v1834_v2  ;;  %904 = vmatpush.bf16.msrb.mxu3 %v1810_v58 }
 0x23e   :  { %866 = vmatpush.bf16.msrb.mxu0 %v1832_v1  ;;  %879 = vmatpush.bf16.msrb.mxu1 %v1844_v6 }
 0x23f   :  { %892 = vmatpush.bf16.msrb.mxu2 %v1870_v20  ;;  %905 = vmatpush.bf16.msrb.mxu3 %v1846_v9 }
 0x242   :  { %867 = vmatpush.bf16.msrb.mxu0 %v1868_v19  ;;  %880 = vmatpush.bf16.msrb.mxu1 %v1880_v24 }
 0x243   :  { %893 = vmatpush.bf16.msrb.mxu2 %v1909_v38  ;;  %906 = vmatpush.bf16.msrb.mxu3 %v1882_v25 }
 0x246   :  { %868 = vmatpush.bf16.msrb.mxu0 %v1904_v36  ;;  %881 = vmatpush.bf16.msrb.mxu1 %v1913_v39 }
 0x247   :  { %894 = vmatpush.bf16.msrb.mxu2 %v1927_v48  ;;  %907 = vmatpush.bf16.msrb.mxu3 %v1915_v40 }
 0x2a5   :  { %v616_v27 = vpop.f32.mrf.mxu0  ;;  %v629_v49 = vpop.f32.mrf.mxu1 }
 0x2a6   :  { %v659_v50 = vadd.f32 %v1404_v30, %v616_v27  ;;  %v660_v51 = vadd.f32 %v1405_v29, %v629_v49 }
 0x2a8   :  { %v1408_v52 = vmul.f32 -1.442695, %v659_v50  ;;  %v1409_v55 = vmul.f32 -1.442695, %v660_v51 }
 0x2aa   :  { %1524 = vpow2.f32 %v1408_v52 }
 0x2ab   :  { %1526 = vpow2.f32 %v1409_v55 }
 0x2ac   :  { %v642_v59 = vpop.f32.mrf.mxu2  ;;  %v655_v60 = vpop.f32.mrf.mxu3 }
 0x2ad   :  { %v662_v61 = vadd.f32 %v1407_v56, %v655_v60  ;;  %v618_v62 = vpop.f32.mrf.mxu0  ;;  %v631_v63 = vpop.f32.mrf.mxu1  ;;  %v661_v37 = vadd.f32 %v1406_v18, %v642_v59 }
 0x2af   :  { %v1410_v0 = vmul.f32 -1.442695, %v662_v61 }
 0x2b0   :  { %v1525_v4 = vpop.eup %1524 }
 0x2b1   :  { %v1527_v5 = vpop.eup %1526  ;;  %v666_v10 = vadd.f32 1.0, %v1525_v4  ;;  %1528 = vpow2.f32 %v1410_v0 }
 0x2b2   :  { %v685_v22 = vadd.f32 1.0, %v1527_v5 }
 0x2b3   :  { %1530 = vrcp.f32 %v666_v10  ;;  %v678_v30 = vand.u32 2147483648, %v666_v10  ;;  %v676_v49 = vand.u32 2147483647, %v666_v10  ;;  %vm672_vm6 = vweird.f32 %v666_v10 }
 0x2b4   :  { %1532 = vrcp.f32 %v685_v22  ;;  %v644_v15 = vpop.f32.mrf.mxu2  ;;  %v657_v26 = vpop.f32.mrf.mxu3  ;;  %v697_v29 = vand.u32 2147483648, %v685_v22  ;;  %v695_v51 = vand.u32 2147483647, %v685_v22  ;;  %vm691_vm7 = vweird.f32 %v685_v22 }
 0x2b5   :  { %v679_v56 = vor.u32 1.1754944e-38, %v678_v30  ;;  %vm677_vm10 = vcmp.eq.f32.partialorder %v676_v49, 8.507059e+37  ;;  %v1413_v30 = vld [vmem:[%s2313_s0 + $0x88] sm:$0xff] }
 0x2b6   :  { %v698_v61 = vor.u32 1.1754944e-38, %v697_v29  ;;  %vm696_vm11 = vcmp.eq.f32.partialorder %v695_v51, 8.507059e+37 }
 0x2b7   :  { %v1529_v14 = vpop.eup %1528 }
 0x2b8   :  { %v705_v43 = vadd.f32 1.0, %v1529_v14 }
 0x2b9   :  { %v1531_v35 = vpop.eup %1530 }
 0x2ba   :  { %v1533_v44 = vpop.eup %1532  ;;  %v668_v31 = vmul.f32 %v1531_v35, %v666_v10  ;;  %1534 = vrcp.f32 %v705_v43  ;;  %vm673_vm4 = vweird.f32 %v1531_v35  ;;  %vm711_vm13 = vweird.f32 %v705_v43 }
 0x2bb   :  { %v687_v47 = vmul.f32 %v1533_v44, %v685_v22  ;;  %1536 = vtanh.f32 %v661_v37  ;;  %vm692_vm5 = vweird.f32 %v1533_v44  ;;  %vm674_vm8 = vmor %vm672_vm6, %vm673_vm4  ;;  %v717_v37 = vand.u32 2147483648, %v705_v43 }
 0x2bc   :  { %v669_v23 = vsub.f32 1.0, %v668_v31  ;;  %vm693_vm9 = vmor %vm691_vm7, %vm692_vm5 }
 0x2bd   :  { %v688_v13 = vsub.f32 1.0, %v687_v47  ;;  %v718_v47 = vor.u32 1.1754944e-38, %v717_v37 }
 0x2be   :  { %v670_v27 = vmul.f32 %v1531_v35, %v669_v23 }
 0x2bf   :  { %v689_v50 = vmul.f32 %v1533_v44, %v688_v13 }
 0x2c0   :  { %v1535_v52 = vpop.eup %1534  ;;  %v671_v55 = vadd.f32 %v1531_v35, %v670_v27 }
 0x2c1   :  { %v690_v59 = vadd.f32 %v1533_v44, %v689_v50  ;;  %v707_v60 = vmul.f32 %v1535_v52, %v705_v43  ;;  %v1537_v63 = vpop.eup %1536  ;;  %vm712_vm12 = vweird.f32 %v1535_v52 }
 0x2c2   :  { %v675_v62 = vsel %vm674_vm8, %v1531_v35, %v671_v55  ;;  %v715_v35 = vand.u32 2147483647, %v705_v43  ;;  %vm713_vm14 = vmor %vm711_vm13, %vm712_vm12  ;;  %v1412_v43 = vld [vmem:[%s2313_s0 + $0x80] sm:$0xff]  ;;  %v1415_v55 = vld [vmem:[%s2313_s0 + $0x98] sm:$0xff] }
 0x2c3   :  { %v680_v0 = vsel %vm677_vm10, %v679_v56, %v675_v62  ;;  %v694_v4 = vsel %vm693_vm9, %v1533_v44, %v690_v59  ;;  %v708_v5 = vsub.f32 1.0, %v707_v60 }
 0x2c4   :  { %v699_v15 = vsel %vm696_vm11, %v698_v61, %v694_v4  ;;  %v722_v26 = vmul.f32 %v1537_v63, %v680_v0  ;;  %vm716_vm15 = vcmp.eq.f32.partialorder %v715_v35, 8.507059e+37 }
 0x2c5   :  { %v721_v18 = vmul.f32 %v699_v15, %v2111_v11  ;;  %v709_v14 = vmul.f32 %v1535_v52, %v708_v5 }
 0x2c7   :  { %v2162_v10 = vadd.f32 %v722_v26, %v721_v18  ;;  %v710_v22 = vadd.f32 %v1535_v52, %v709_v14  ;;  %v1414_v14 = vld [vmem:[%s2313_s0 + $0x90] sm:$0xff] }
 0x2c9   :  { %1538 = vtanh.f32 %v2162_v10  ;;  %v714_v31 = vsel %vm713_vm14, %v1535_v52, %v710_v22 }
 0x2ca   :  { %v719_v23 = vsel %vm716_vm15, %v718_v47, %v714_v31 }
 0x2cf   :  { %v1539_v44 = vpop.eup %1538 }
 0x2d0   :  { %v725_v13 = vmul.f32 %v1539_v44, %v719_v23 }
 0x2d2   :  { %1411 = vst [vmem:[%s2315_s4 + $0x18] sm:$0xff] %v725_v13  ;;  %v733_v11 = vpack.c.bf16 %v725_v13, %v725_v13 }
 0x2d4   :  { %742 = vmatmul.bf16.vlgmr.msra.gmra.mxu0 %v733_v11  ;;  %755 = vmatmul.bf16.vlgmr.msra.gmra.mxu1 %v733_v11 }
 0x2d5   :  { %768 = vmatmul.bf16.vlgmr.msra.gmra.mxu2 %v733_v11  ;;  %781 = vmatmul.bf16.vlgmr.msra.gmra.mxu3 %v733_v11 }
 0x2d6   :  { %988 = vmatpush.bf16.msra.mxu0 %v1648_v3  ;;  %1001 = vmatpush.bf16.msra.mxu1 %v1659_v7 }
 0x2d7   :  { %1014 = vmatpush.bf16.msra.mxu2 %v1699_v21  ;;  %1027 = vmatpush.bf16.msra.mxu3 %v1661_v8 }
 0x2da   :  { %989 = vmatpush.bf16.msra.mxu0 %v1673_v12  ;;  %1002 = vmatpush.bf16.msra.mxu1 %v1686_v16 }
 0x2db   :  { %1015 = vmatpush.bf16.msra.mxu2 %v1738_v34  ;;  %1028 = vmatpush.bf16.msra.mxu3 %v1688_v17 }
 0x2de   :  { %990 = vmatpush.bf16.msra.mxu0 %v1721_v28  ;;  %1003 = vmatpush.bf16.msra.mxu1 %v1734_v32 }
 0x2df   :  { %1016 = vmatpush.bf16.msra.mxu2 %v1762_v42  ;;  %1029 = vmatpush.bf16.msra.mxu3 %v1736_v33 }
 0x2e2   :  { %991 = vmatpush.bf16.msra.mxu0 %v1760_v41  ;;  %1004 = vmatpush.bf16.msra.mxu1 %v1772_v45 }
 0x2e3   :  { %1017 = vmatpush.bf16.msra.mxu2 %v1798_v54  ;;  %1030 = vmatpush.bf16.msra.mxu3 %v1774_v46 }
 0x2e6   :  { %992 = vmatpush.bf16.msra.mxu0 %v1796_v53  ;;  %1005 = vmatpush.bf16.msra.mxu1 %v1808_v57 }
 0x2e7   :  { %1018 = vmatpush.bf16.msra.mxu2 %v1834_v2  ;;  %1031 = vmatpush.bf16.msra.mxu3 %v1810_v58 }
 0x2ea   :  { %993 = vmatpush.bf16.msra.mxu0 %v1832_v1  ;;  %1006 = vmatpush.bf16.msra.mxu1 %v1844_v6 }
 0x2eb   :  { %1019 = vmatpush.bf16.msra.mxu2 %v1870_v20  ;;  %1032 = vmatpush.bf16.msra.mxu3 %v1846_v9 }
 0x2ee   :  { %994 = vmatpush.bf16.msra.mxu0 %v1868_v19  ;;  %1007 = vmatpush.bf16.msra.mxu1 %v1880_v24 }
 0x2ef   :  { %1020 = vmatpush.bf16.msra.mxu2 %v1909_v38  ;;  %1033 = vmatpush.bf16.msra.mxu3 %v1882_v25 }
 0x2f2   :  { %995 = vmatpush.bf16.msra.mxu0 %v1904_v36  ;;  %1008 = vmatpush.bf16.msra.mxu1 %v1913_v39 }
 0x2f3   :  { %1021 = vmatpush.bf16.msra.mxu2 %v1927_v48  ;;  %1034 = vmatpush.bf16.msra.mxu3 %v1915_v40 }
 0x351   :  { %v743_v29 = vpop.f32.mrf.mxu0  ;;  %v756_v27 = vpop.f32.mrf.mxu1 }
 0x352   :  { %v786_v49 = vadd.f32 %v1412_v43, %v743_v29  ;;  %v787_v50 = vadd.f32 %v1413_v30, %v756_v27 }
 0x354   :  { %v1416_v51 = vmul.f32 -1.442695, %v786_v49  ;;  %v1417_v52 = vmul.f32 -1.442695, %v787_v50 }
 0x356   :  { %1540 = vpow2.f32 %v1416_v51 }
 0x357   :  { %1542 = vpow2.f32 %v1417_v52 }
 0x358   :  { %v769_v56 = vpop.f32.mrf.mxu2  ;;  %v782_v59 = vpop.f32.mrf.mxu3 }
 0x359   :  { %v789_v60 = vadd.f32 %v1415_v55, %v782_v59  ;;  %v745_v61 = vpop.f32.mrf.mxu0  ;;  %v758_v62 = vpop.f32.mrf.mxu1  ;;  %v788_v31 = vadd.f32 %v1414_v14, %v769_v56 }
 0x35b   :  { %v1418_v63 = vmul.f32 -1.442695, %v789_v60 }
 0x35c   :  { %v1541_v0 = vpop.eup %1540 }
 0x35d   :  { %v1543_v4 = vpop.eup %1542  ;;  %v793_v5 = vadd.f32 1.0, %v1541_v0  ;;  %1544 = vpow2.f32 %v1418_v63 }
 0x35e   :  { %v812_v15 = vadd.f32 1.0, %v1543_v4 }
 0x35f   :  { %1546 = vrcp.f32 %v793_v5  ;;  %v805_v43 = vand.u32 2147483648, %v793_v5  ;;  %v803_v27 = vand.u32 2147483647, %v793_v5  ;;  %vm799_vm2 = vweird.f32 %v793_v5 }
 0x360   :  { %1548 = vrcp.f32 %v812_v15  ;;  %v771_v26 = vpop.f32.mrf.mxu2  ;;  %v784_v18 = vpop.f32.mrf.mxu3  ;;  %v824_v30 = vand.u32 2147483648, %v812_v15  ;;  %v822_v50 = vand.u32 2147483647, %v812_v15  ;;  %vm818_vm3 = vweird.f32 %v812_v15 }
 0x361   :  { %v806_v55 = vor.u32 1.1754944e-38, %v805_v43  ;;  %vm804_vm6 = vcmp.eq.f32.partialorder %v803_v27, 8.507059e+37 }
 0x362   :  { %v825_v60 = vor.u32 1.1754944e-38, %v824_v30  ;;  %vm823_vm7 = vcmp.eq.f32.partialorder %v822_v50, 8.507059e+37 }
 0x363   :  { %v1545_v22 = vpop.eup %1544 }
 0x364   :  { %v832_v37 = vadd.f32 1.0, %v1545_v22 }
 0x365   :  { %v1547_v35 = vpop.eup %1546 }
 0x366   :  { %v1549_v47 = vpop.eup %1548  ;;  %v795_v44 = vmul.f32 %v1547_v35, %v793_v5  ;;  %1550 = vrcp.f32 %v832_v37  ;;  %vm800_vm0 = vweird.f32 %v1547_v35  ;;  %vm838_vm9 = vweird.f32 %v832_v37 }
 0x367   :  { %v814_v23 = vmul.f32 %v1549_v47, %v812_v15  ;;  %1552 = vtanh.f32 %v788_v31  ;;  %vm819_vm1 = vweird.f32 %v1549_v47  ;;  %vm801_vm4 = vmor %vm799_vm2, %vm800_vm0  ;;  %v844_v31 = vand.u32 2147483648, %v832_v37 }
 0x368   :  { %v796_v13 = vsub.f32 1.0, %v795_v44  ;;  %vm820_vm5 = vmor %vm818_vm3, %vm819_vm1 }
 0x369   :  { %v815_v11 = vsub.f32 1.0, %v814_v23  ;;  %v845_v23 = vor.u32 1.1754944e-38, %v844_v31 }
 0x36a   :  { %v797_v29 = vmul.f32 %v1547_v35, %v796_v13 }
 0x36b   :  { %v816_v49 = vmul.f32 %v1549_v47, %v815_v11 }
 0x36c   :  { %v1551_v51 = vpop.eup %1550  ;;  %v798_v52 = vadd.f32 %v1547_v35, %v797_v29 }
 0x36d   :  { %v817_v56 = vadd.f32 %v1549_v47, %v816_v49  ;;  %v834_v59 = vmul.f32 %v1551_v51, %v832_v37  ;;  %v1553_v62 = vpop.eup %1552  ;;  %vm839_vm8 = vweird.f32 %v1551_v51 }
 0x36e   :  { %v802_v61 = vsel %vm801_vm4, %v1547_v35, %v798_v52  ;;  %v842_v35 = vand.u32 2147483647, %v832_v37  ;;  %vm840_vm10 = vmor %vm838_vm9, %vm839_vm8 }
 0x36f   :  { %v807_v63 = vsel %vm804_vm6, %v806_v55, %v802_v61  ;;  %v821_v0 = vsel %vm820_vm5, %v1549_v47, %v817_v56  ;;  %v835_v4 = vsub.f32 1.0, %v834_v59 }
 0x370   :  { %v826_v26 = vsel %vm823_vm7, %v825_v60, %v821_v0  ;;  %v849_v18 = vmul.f32 %v1553_v62, %v807_v63  ;;  %vm843_vm11 = vcmp.eq.f32.partialorder %v842_v35, 8.507059e+37 }
 0x371   :  { %v848_v14 = vmul.f32 %v826_v26, %v2162_v10  ;;  %v836_v22 = vmul.f32 %v1551_v51, %v835_v4 }
 0x373   :  { %v2213_v5 = vadd.f32 %v849_v18, %v848_v14  ;;  %v837_v15 = vadd.f32 %v1551_v51, %v836_v22 }
 0x375   :  { %1554 = vtanh.f32 %v2213_v5  ;;  %v841_v44 = vsel %vm840_vm10, %v1551_v51, %v837_v15 }
 0x376   :  { %v846_v13 = vsel %vm843_vm11, %v845_v23, %v841_v44 }
 0x37b   :  { %v1555_v47 = vpop.eup %1554 }
 0x37c   :  { %v852_v11 = vmul.f32 %v1555_v47, %v846_v13 }
 0x37e   :  { %1419 = vst [vmem:[%s2315_s4 + $0x20] sm:$0xff] %v852_v11  ;;  %v860_v10 = vpack.c.bf16 %v852_v11, %v852_v11  ;;  %v1428_v11 = vld [vmem:[%s2313_s0 + $0xc0] sm:$0xff] }
 0x380   :  { %869 = vmatmul.bf16.vlgmr.msrb.gmra.mxu0 %v860_v10  ;;  %882 = vmatmul.bf16.vlgmr.msrb.gmra.mxu1 %v860_v10 }
 0x381   :  { %895 = vmatmul.bf16.vlgmr.msrb.gmra.mxu2 %v860_v10  ;;  %908 = vmatmul.bf16.vlgmr.msrb.gmra.mxu3 %v860_v10  ;;  %v1429_v10 = vld [vmem:[%s2313_s0 + $0xc8] sm:$0xff] }
 0x382   :  { %1115 = vmatpush.bf16.msrb.mxu0 %v1648_v3  ;;  %1128 = vmatpush.bf16.msrb.mxu1 %v1659_v7  ;;  %v1420_v3 = vld [vmem:[%s2313_s0 + $0xa0] sm:$0xff]  ;;  %v1421_v7 = vld [vmem:[%s2313_s0 + $0xa8] sm:$0xff] }
 0x383   :  { %1141 = vmatpush.bf16.msrb.mxu2 %v1699_v21  ;;  %1154 = vmatpush.bf16.msrb.mxu3 %v1661_v8 }
 0x386   :  { %1116 = vmatpush.bf16.msrb.mxu0 %v1673_v12  ;;  %1129 = vmatpush.bf16.msrb.mxu1 %v1686_v16 }
 0x387   :  { %1142 = vmatpush.bf16.msrb.mxu2 %v1738_v34  ;;  %1155 = vmatpush.bf16.msrb.mxu3 %v1688_v17 }
 0x38a   :  { %1117 = vmatpush.bf16.msrb.mxu0 %v1721_v28  ;;  %1130 = vmatpush.bf16.msrb.mxu1 %v1734_v32  ;;  %v1423_v32 = vld [vmem:[%s2313_s0 + $0xb8] sm:$0xff] }
 0x38b   :  { %1143 = vmatpush.bf16.msrb.mxu2 %v1762_v42  ;;  %1156 = vmatpush.bf16.msrb.mxu3 %v1736_v33 }
 0x38e   :  { %1118 = vmatpush.bf16.msrb.mxu0 %v1760_v41  ;;  %1131 = vmatpush.bf16.msrb.mxu1 %v1772_v45 }
 0x38f   :  { %1144 = vmatpush.bf16.msrb.mxu2 %v1798_v54  ;;  %1157 = vmatpush.bf16.msrb.mxu3 %v1774_v46 }
 0x392   :  { %1119 = vmatpush.bf16.msrb.mxu0 %v1796_v53  ;;  %1132 = vmatpush.bf16.msrb.mxu1 %v1808_v57 }
 0x393   :  { %1145 = vmatpush.bf16.msrb.mxu2 %v1834_v2  ;;  %1158 = vmatpush.bf16.msrb.mxu3 %v1810_v58 }
 0x396   :  { %1120 = vmatpush.bf16.msrb.mxu0 %v1832_v1  ;;  %1133 = vmatpush.bf16.msrb.mxu1 %v1844_v6  ;;  %v1422_v6 = vld [vmem:[%s2313_s0 + $0xb0] sm:$0xff] }
 0x397   :  { %1146 = vmatpush.bf16.msrb.mxu2 %v1870_v20  ;;  %1159 = vmatpush.bf16.msrb.mxu3 %v1846_v9 }
 0x39a   :  { %1121 = vmatpush.bf16.msrb.mxu0 %v1868_v19  ;;  %1134 = vmatpush.bf16.msrb.mxu1 %v1880_v24 }
 0x39b   :  { %1147 = vmatpush.bf16.msrb.mxu2 %v1909_v38  ;;  %1160 = vmatpush.bf16.msrb.mxu3 %v1882_v25 }
 0x39e   :  { %1122 = vmatpush.bf16.msrb.mxu0 %v1904_v36  ;;  %1135 = vmatpush.bf16.msrb.mxu1 %v1913_v39 }
 0x39f   :  { %1148 = vmatpush.bf16.msrb.mxu2 %v1927_v48  ;;  %1161 = vmatpush.bf16.msrb.mxu3 %v1915_v40 }
 0x3fd   :  { %v870_v8 = vpop.f32.mrf.mxu0  ;;  %v883_v12 = vpop.f32.mrf.mxu1 }
 0x3fe   :  { %v913_v16 = vadd.f32 %v1420_v3, %v870_v8  ;;  %v914_v17 = vadd.f32 %v1421_v7, %v883_v12 }
 0x400   :  { %v1424_v21 = vmul.f32 -1.442695, %v913_v16  ;;  %v1425_v28 = vmul.f32 -1.442695, %v914_v17 }
 0x402   :  { %1556 = vpow2.f32 %v1424_v21  ;;  %v1431_v21 = vld [vmem:[%s2313_s0 + $0xd8] sm:$0xff] }
 0x403   :  { %1558 = vpow2.f32 %v1425_v28 }
 0x404   :  { %v896_v33 = vpop.f32.mrf.mxu2  ;;  %v909_v34 = vpop.f32.mrf.mxu3 }
 0x405   :  { %v916_v41 = vadd.f32 %v1423_v32, %v909_v34  ;;  %v872_v42 = vpop.f32.mrf.mxu0  ;;  %v885_v45 = vpop.f32.mrf.mxu1  ;;  %v915_v24 = vadd.f32 %v1422_v6, %v896_v33 }
 0x407   :  { %v1426_v46 = vmul.f32 -1.442695, %v916_v41 }
 0x408   :  { %v1557_v53 = vpop.eup %1556 }
 0x409   :  { %v1559_v54 = vpop.eup %1558  ;;  %v920_v57 = vadd.f32 1.0, %v1557_v53  ;;  %1560 = vpow2.f32 %v1426_v46 }
 0x40a   :  { %v939_v58 = vadd.f32 1.0, %v1559_v54 }
 0x40b   :  { %1562 = vrcp.f32 %v920_v57  ;;  %v932_v48 = vand.u32 2147483648, %v920_v57  ;;  %v930_v30 = vand.u32 2147483647, %v920_v57  ;;  %vm926_vm14 = vweird.f32 %v920_v57 }
 0x40c   :  { %1564 = vrcp.f32 %v939_v58  ;;  %v898_v1 = vpop.f32.mrf.mxu2  ;;  %v911_v2 = vpop.f32.mrf.mxu3  ;;  %v951_v37 = vand.u32 2147483648, %v939_v58  ;;  %v949_v27 = vand.u32 2147483647, %v939_v58  ;;  %vm945_vm15 = vweird.f32 %v939_v58 }
 0x40d   :  { %v933_v51 = vor.u32 1.1754944e-38, %v932_v48  ;;  %vm931_vm2 = vcmp.eq.f32.partialorder %v930_v30, 8.507059e+37  ;;  %v1430_v1 = vld [vmem:[%s2313_s0 + $0xd0] sm:$0xff] }
 0x40e   :  { %v952_v56 = vor.u32 1.1754944e-38, %v951_v37  ;;  %vm950_vm3 = vcmp.eq.f32.partialorder %v949_v27, 8.507059e+37 }
 0x40f   :  { %v1561_v9 = vpop.eup %1560 }
 0x410   :  { %v959_v19 = vadd.f32 1.0, %v1561_v9 }
 0x411   :  { %v1563_v20 = vpop.eup %1562 }
 0x412   :  { %v1565_v25 = vpop.eup %1564  ;;  %v922_v36 = vmul.f32 %v1563_v20, %v920_v57  ;;  %1566 = vrcp.f32 %v959_v19  ;;  %vm927_vm12 = vweird.f32 %v1563_v20  ;;  %v971_v15 = vand.u32 2147483648, %v959_v19 }
 0x413   :  { %v941_v38 = vmul.f32 %v1565_v25, %v939_v58  ;;  %1568 = vtanh.f32 %v915_v24  ;;  %vm946_vm13 = vweird.f32 %v1565_v25  ;;  %vm928_vm0 = vmor %vm926_vm14, %vm927_vm12  ;;  %vm965_vm5 = vweird.f32 %v959_v19 }
 0x414   :  { %v923_v39 = vsub.f32 1.0, %v922_v36  ;;  %vm947_vm1 = vmor %vm945_vm15, %vm946_vm13  ;;  %v969_v31 = vand.u32 2147483647, %v959_v19  ;;  %v972_v44 = vor.u32 1.1754944e-38, %v971_v15 }
 0x415   :  { %v942_v40 = vsub.f32 1.0, %v941_v38 }
 0x416   :  { %v924_v43 = vmul.f32 %v1563_v20, %v923_v39  ;;  %vm970_vm7 = vcmp.eq.f32.partialorder %v969_v31, 8.507059e+37 }
 0x417   :  { %v943_v29 = vmul.f32 %v1565_v25, %v942_v40 }
 0x418   :  { %v1567_v49 = vpop.eup %1566  ;;  %v925_v50 = vadd.f32 %v1563_v20, %v924_v43 }
 0x419   :  { %v944_v52 = vadd.f32 %v1565_v25, %v943_v29  ;;  %v961_v55 = vmul.f32 %v1567_v49, %v959_v19  ;;  %v1569_v60 = vpop.eup %1568  ;;  %vm966_vm4 = vweird.f32 %v1567_v49 }
 0x41a   :  { %v929_v59 = vsel %vm928_vm0, %v1563_v20, %v925_v50  ;;  %vm967_vm6 = vmor %vm965_vm5, %vm966_vm4 }
 0x41b   :  { %v934_v61 = vsel %vm931_vm2, %v933_v51, %v929_v59  ;;  %v948_v62 = vsel %vm947_vm1, %v1565_v25, %v944_v52  ;;  %v962_v63 = vsub.f32 1.0, %v961_v55 }
 0x41c   :  { %v953_v0 = vsel %vm950_vm3, %v952_v56, %v948_v62  ;;  %v976_v4 = vmul.f32 %v1569_v60, %v934_v61 }
 0x41d   :  { %v975_v26 = vmul.f32 %v953_v0, %v2213_v5  ;;  %v963_v18 = vmul.f32 %v1567_v49, %v962_v63 }
 0x41f   :  { %v2264_v14 = vadd.f32 %v976_v4, %v975_v26  ;;  %v964_v22 = vadd.f32 %v1567_v49, %v963_v18 }
 0x421   :  { %1570 = vtanh.f32 %v2264_v14  ;;  %v968_v35 = vsel %vm967_vm6, %v1567_v49, %v964_v22 }
 0x422   :  { %v973_v47 = vsel %vm970_vm7, %v972_v44, %v968_v35 }
 0x427   :  { %v1571_v23 = vpop.eup %1570 }
 0x428   :  { %v979_v13 = vmul.f32 %v1571_v23, %v973_v47 }
 0x42a   :  { %1427 = vst [vmem:[%s2315_s4 + $0x28] sm:$0xff] %v979_v13  ;;  %v987_v5 = vpack.c.bf16 %v979_v13, %v979_v13  ;;  %v1436_v13 = vld [vmem:[%s2313_s0 + $0xe0] sm:$0xff] }
 0x42c   :  { %996 = vmatmul.bf16.vlgmr.msra.gmra.mxu0 %v987_v5  ;;  %1009 = vmatmul.bf16.vlgmr.msra.gmra.mxu1 %v987_v5 }
 0x42d   :  { %1022 = vmatmul.bf16.vlgmr.msra.gmra.mxu2 %v987_v5  ;;  %1035 = vmatmul.bf16.vlgmr.msra.gmra.mxu3 %v987_v5  ;;  %v1437_v5 = vld [vmem:[%s2313_s0 + $0xe8] sm:$0xff] }
 0x4a9   :  { %v997_v3 = vpop.f32.mrf.mxu0  ;;  %v1010_v7 = vpop.f32.mrf.mxu1 }
 0x4aa   :  { %v1040_v8 = vadd.f32 %v1428_v11, %v997_v3  ;;  %v1041_v12 = vadd.f32 %v1429_v10, %v1010_v7 }
 0x4ac   :  { %v1432_v16 = vmul.f32 -1.442695, %v1040_v8  ;;  %v1433_v17 = vmul.f32 -1.442695, %v1041_v12 }
 0x4ae   :  { %1572 = vpow2.f32 %v1432_v16  ;;  %v1439_v16 = vld [vmem:[%s2313_s0 + $0xf8] sm:$0xff] }
 0x4af   :  { %1574 = vpow2.f32 %v1433_v17 }
 0x4b0   :  { %v1023_v28 = vpop.f32.mrf.mxu2  ;;  %v1036_v32 = vpop.f32.mrf.mxu3 }
 0x4b1   :  { %v1043_v33 = vadd.f32 %v1431_v21, %v1036_v32  ;;  %v999_v34 = vpop.f32.mrf.mxu0  ;;  %v1012_v41 = vpop.f32.mrf.mxu1  ;;  %v1042_v19 = vadd.f32 %v1430_v1, %v1023_v28 }
 0x4b3   :  { %v1434_v42 = vmul.f32 -1.442695, %v1043_v33 }
 0x4b4   :  { %v1573_v45 = vpop.eup %1572 }
 0x4b5   :  { %v1575_v46 = vpop.eup %1574  ;;  %v1047_v53 = vadd.f32 1.0, %v1573_v45  ;;  %1576 = vpow2.f32 %v1434_v42 }
 0x4b6   :  { %v1066_v54 = vadd.f32 1.0, %v1575_v46 }
 0x4b7   :  { %1578 = vrcp.f32 %v1047_v53  ;;  %v1059_v39 = vand.u32 2147483648, %v1047_v53  ;;  %v1057_v37 = vand.u32 2147483647, %v1047_v53  ;;  %vm1053_vm10 = vweird.f32 %v1047_v53 }
 0x4b8   :  { %1580 = vrcp.f32 %v1066_v54  ;;  %v1025_v57 = vpop.f32.mrf.mxu2  ;;  %v1038_v58 = vpop.f32.mrf.mxu3  ;;  %v1078_v40 = vand.u32 2147483648, %v1066_v54  ;;  %v1076_v30 = vand.u32 2147483647, %v1066_v54  ;;  %vm1072_vm11 = vweird.f32 %v1066_v54 }
 0x4b9   :  { %v1060_v49 = vor.u32 1.1754944e-38, %v1059_v39  ;;  %vm1058_vm14 = vcmp.eq.f32.partialorder %v1057_v37, 8.507059e+37  ;;  %v1438_v57 = vld [vmem:[%s2313_s0 + $0xf0] sm:$0xff] }
 0x4ba   :  { %v1079_v52 = vor.u32 1.1754944e-38, %v1078_v40  ;;  %vm1077_vm15 = vcmp.eq.f32.partialorder %v1076_v30, 8.507059e+37 }
 0x4bb   :  { %v1577_v2 = vpop.eup %1576 }
 0x4bc   :  { %v1086_v6 = vadd.f32 1.0, %v1577_v2 }
 0x4bd   :  { %v1579_v9 = vpop.eup %1578 }
 0x4be   :  { %v1581_v20 = vpop.eup %1580  ;;  %v1049_v24 = vmul.f32 %v1579_v9, %v1047_v53  ;;  %1582 = vrcp.f32 %v1086_v6  ;;  %vm1054_vm8 = vweird.f32 %v1579_v9  ;;  %v1098_v22 = vand.u32 2147483648, %v1086_v6 }
 0x4bf   :  { %v1068_v25 = vmul.f32 %v1581_v20, %v1066_v54  ;;  %1584 = vtanh.f32 %v1042_v19  ;;  %vm1073_vm9 = vweird.f32 %v1581_v20  ;;  %vm1055_vm12 = vmor %vm1053_vm10, %vm1054_vm8  ;;  %vm1092_vm1 = vweird.f32 %v1086_v6 }
 0x4c0   :  { %v1050_v36 = vsub.f32 1.0, %v1049_v24  ;;  %vm1074_vm13 = vmor %vm1072_vm11, %vm1073_vm9  ;;  %v1096_v15 = vand.u32 2147483647, %v1086_v6  ;;  %v1099_v35 = vor.u32 1.1754944e-38, %v1098_v22 }
 0x4c1   :  { %v1069_v38 = vsub.f32 1.0, %v1068_v25 }
 0x4c2   :  { %v1051_v48 = vmul.f32 %v1579_v9, %v1050_v36  ;;  %vm1097_vm3 = vcmp.eq.f32.partialorder %v1096_v15, 8.507059e+37 }
 0x4c3   :  { %v1070_v43 = vmul.f32 %v1581_v20, %v1069_v38 }
 0x4c4   :  { %v1583_v29 = vpop.eup %1582  ;;  %v1052_v27 = vadd.f32 %v1579_v9, %v1051_v48 }
 0x4c5   :  { %v1071_v50 = vadd.f32 %v1581_v20, %v1070_v43  ;;  %v1088_v51 = vmul.f32 %v1583_v29, %v1086_v6  ;;  %v1585_v56 = vpop.eup %1584  ;;  %vm1093_vm0 = vweird.f32 %v1583_v29 }
 0x4c6   :  { %v1056_v55 = vsel %vm1055_vm12, %v1579_v9, %v1052_v27  ;;  %vm1094_vm2 = vmor %vm1092_vm1, %vm1093_vm0 }
 0x4c7   :  { %v1061_v59 = vsel %vm1058_vm14, %v1060_v49, %v1056_v55  ;;  %v1075_v60 = vsel %vm1074_vm13, %v1581_v20, %v1071_v50  ;;  %v1089_v61 = vsub.f32 1.0, %v1088_v51 }
 0x4c8   :  { %v1080_v62 = vsel %vm1077_vm15, %v1079_v52, %v1075_v60  ;;  %v1103_v63 = vmul.f32 %v1585_v56, %v1061_v59 }
 0x4c9   :  { %v1102_v0 = vmul.f32 %v1080_v62, %v2264_v14  ;;  %v1090_v4 = vmul.f32 %v1583_v29, %v1089_v61 }
 0x4cb   :  { %v2283_v26 = vadd.f32 %v1103_v63, %v1102_v0  ;;  %v1091_v18 = vadd.f32 %v1583_v29, %v1090_v4 }
 0x4cd   :  { %1586 = vtanh.f32 %v2283_v26  ;;  %v1095_v31 = vsel %vm1094_vm2, %v1583_v29, %v1091_v18 }
 0x4ce   :  { %v1100_v23 = vsel %vm1097_vm3, %v1099_v35, %v1095_v31 }
 0x4d3   :  { %v1587_v44 = vpop.eup %1586 }
 0x4d4   :  { %v1106_v47 = vmul.f32 %v1587_v44, %v1100_v23 }
 0x4d6   :  { %1435 = vst [vmem:[%s2315_s4 + $0x30] sm:$0xff] %v1106_v47  ;;  %v1114_v14 = vpack.c.bf16 %v1106_v47, %v1106_v47 }
 0x4d8   :  { %1123 = vmatmul.bf16.vlgmr.msrb.gmra.mxu0 %v1114_v14  ;;  %1136 = vmatmul.bf16.vlgmr.msrb.gmra.mxu1 %v1114_v14 }
 0x4d9   :  { %1149 = vmatmul.bf16.vlgmr.msrb.gmra.mxu2 %v1114_v14  ;;  %1162 = vmatmul.bf16.vlgmr.msrb.gmra.mxu3 %v1114_v14 }
 0x555   :  { %v1124_v11 = vpop.f32.mrf.mxu0  ;;  %v1137_v10 = vpop.f32.mrf.mxu1 }
 0x556   :  { %v1167_v3 = vadd.f32 %v1436_v13, %v1124_v11  ;;  %v1168_v7 = vadd.f32 %v1437_v5, %v1137_v10 }
 0x558   :  { %v1440_v8 = vmul.f32 -1.442695, %v1167_v3  ;;  %v1441_v12 = vmul.f32 -1.442695, %v1168_v7 }
 0x55a   :  { %1588 = vpow2.f32 %v1440_v8 }
 0x55b   :  { %1590 = vpow2.f32 %v1441_v12 }
 0x55c   :  { %v1150_v17 = vpop.f32.mrf.mxu2  ;;  %v1163_v21 = vpop.f32.mrf.mxu3 }
 0x55d   :  { %v1170_v28 = vadd.f32 %v1439_v16, %v1163_v21  ;;  %v1126_v32 = vpop.f32.mrf.mxu0  ;;  %v1139_v33 = vpop.f32.mrf.mxu1  ;;  %v1169_v6 = vadd.f32 %v1438_v57, %v1150_v17 }
 0x55f   :  { %v1442_v34 = vmul.f32 -1.442695, %v1170_v28 }
 0x560   :  { %v1589_v41 = vpop.eup %1588 }
 0x561   :  { %v1591_v42 = vpop.eup %1590  ;;  %v1174_v45 = vadd.f32 1.0, %v1589_v41  ;;  %1592 = vpow2.f32 %v1442_v34 }
 0x562   :  { %v1193_v46 = vadd.f32 1.0, %v1591_v42 }
 0x563   :  { %1594 = vrcp.f32 %v1174_v45  ;;  %v1186_v36 = vand.u32 2147483648, %v1174_v45  ;;  %v1184_v40 = vand.u32 2147483647, %v1174_v45  ;;  %vm1180_vm6 = vweird.f32 %v1174_v45 }
 0x564   :  { %1596 = vrcp.f32 %v1193_v46  ;;  %v1152_v53 = vpop.f32.mrf.mxu2  ;;  %v1165_v54 = vpop.f32.mrf.mxu3  ;;  %v1205_v38 = vand.u32 2147483648, %v1193_v46  ;;  %v1203_v37 = vand.u32 2147483647, %v1193_v46  ;;  %vm1199_vm7 = vweird.f32 %v1193_v46 }
 0x565   :  { %v1187_v29 = vor.u32 1.1754944e-38, %v1186_v36  ;;  %vm1185_vm10 = vcmp.eq.f32.partialorder %v1184_v40, 8.507059e+37 }
 0x566   :  { %v1206_v50 = vor.u32 1.1754944e-38, %v1205_v38  ;;  %vm1204_vm11 = vcmp.eq.f32.partialorder %v1203_v37, 8.507059e+37 }
 0x567   :  { %v1593_v58 = vpop.eup %1592 }
 0x568   :  { %v1213_v1 = vadd.f32 1.0, %v1593_v58 }
 0x569   :  { %v1595_v2 = vpop.eup %1594 }
 0x56a   :  { %v1597_v9 = vpop.eup %1596  ;;  %v1176_v19 = vmul.f32 %v1595_v2, %v1174_v45  ;;  %1598 = vrcp.f32 %v1213_v1  ;;  %vm1181_vm4 = vweird.f32 %v1595_v2  ;;  %v1225_v18 = vand.u32 2147483648, %v1213_v1 }
 0x56b   :  { %v1195_v20 = vmul.f32 %v1597_v9, %v1193_v46  ;;  %1600 = vtanh.f32 %v1169_v6  ;;  %vm1200_vm5 = vweird.f32 %v1597_v9  ;;  %vm1182_vm8 = vmor %vm1180_vm6, %vm1181_vm4  ;;  %vm1219_vm13 = vweird.f32 %v1213_v1 }
 0x56c   :  { %v1177_v24 = vsub.f32 1.0, %v1176_v19  ;;  %vm1201_vm9 = vmor %vm1199_vm7, %vm1200_vm5  ;;  %v1223_v22 = vand.u32 2147483647, %v1213_v1  ;;  %v1226_v31 = vor.u32 1.1754944e-38, %v1225_v18 }
 0x56d   :  { %v1196_v25 = vsub.f32 1.0, %v1195_v20 }
 0x56e   :  { %v1178_v39 = vmul.f32 %v1595_v2, %v1177_v24  ;;  %vm1224_vm15 = vcmp.eq.f32.partialorder %v1223_v22, 8.507059e+37 }
 0x56f   :  { %v1197_v48 = vmul.f32 %v1597_v9, %v1196_v25 }
 0x570   :  { %v1599_v43 = vpop.eup %1598  ;;  %v1179_v30 = vadd.f32 %v1595_v2, %v1178_v39 }
 0x571   :  { %v1198_v27 = vadd.f32 %v1597_v9, %v1197_v48  ;;  %v1215_v49 = vmul.f32 %v1599_v43, %v1213_v1  ;;  %v1601_v52 = vpop.eup %1600  ;;  %vm1220_vm12 = vweird.f32 %v1599_v43 }
 0x572   :  { %v1183_v51 = vsel %vm1182_vm8, %v1595_v2, %v1179_v30  ;;  %vm1221_vm14 = vmor %vm1219_vm13, %vm1220_vm12 }
 0x573   :  { %v1188_v55 = vsel %vm1185_vm10, %v1187_v29, %v1183_v51  ;;  %v1202_v56 = vsel %vm1201_vm9, %v1597_v9, %v1198_v27  ;;  %v1216_v59 = vsub.f32 1.0, %v1215_v49 }
 0x574   :  { %v1207_v60 = vsel %vm1204_vm11, %v1206_v50, %v1202_v56  ;;  %v1230_v61 = vmul.f32 %v1601_v52, %v1188_v55 }
 0x575   :  { %v1229_v62 = vmul.f32 %v1207_v60, %v2283_v26  ;;  %v1217_v63 = vmul.f32 %v1599_v43, %v1216_v59 }
 0x577   :  { %v1231_v0 = vadd.f32 %v1230_v61, %v1229_v62  ;;  %v1218_v4 = vadd.f32 %v1599_v43, %v1217_v63 }
 0x579   :  { %1602 = vtanh.f32 %v1231_v0  ;;  %1244 = vst [vmem:[%s2316_s6] sm:$0xff] %v1231_v0  ;;  %v1222_v15 = vsel %vm1221_vm14, %v1599_v43, %v1218_v4 }
 0x57a   :  { %v1227_v44 = vsel %vm1224_vm15, %v1226_v31, %v1222_v15 }
 0x57f   :  { %v1603_v35 = vpop.eup %1602 }
 0x580   :  { %v1233_v23 = vmul.f32 %v1603_v35, %v1227_v44 }
 0x582   :  { %1443 = vst [vmem:[%s2315_s4 + $0x38] sm:$0xff] %v1233_v23 }
 0x583   :  { %1242 = vst [vmem:[%s2317_s5] sm:$0xff] %v1233_v23 }

</bundles_post_ra>
